<compile_context>
chip_gen: v7x
topology: tpu7x:2x2x1
jax: 0.10.0
libtpu: 0.0.40
codegen_flags: <defaults>
</compile_context>

<pallas_src>
import functools

import jax
import jax.numpy as jnp
from jax import lax
from jax.experimental import pallas as pl
from jax.experimental.pallas import tpu as pltpu


def _round_up(x, m):
    return (x + m - 1) // m * m


def _pick_row_tile(H, W, C1p, C2p, in_itemsize, out_itemsize,
                   vmem_budget_bytes=24 * 2**20, target_rows=2048):
    """Pick TH (output image-rows per grid step).

    Budget accounting (all inside the single vmem_limit):
      fixed residents : padded image block (x2 buffers) + weights (x2 buffers)
      per-TH cost     : output block (x2 buffers) + f32 accumulator
    Aim for M = TH*W in [512, 2048] rows (amortizes ~0.35us per-grid-step
    overhead) without blowing the v7x-safe budget.
    """
    fixed = (2 * (H + 2) * (W + 2) * C1p * in_itemsize
             + 2 * 9 * C1p * C2p * in_itemsize
             + 2 * C2p * 4)
    avail = max(vmem_budget_bytes - fixed, 0)
    per_th = W * C2p * (2 * out_itemsize + 4)          # out block (x2) + f32 acc
    th_budget = max(1, avail // per_th)
    th_target = max(1, target_rows // max(W, 1))
    th_cap = max(1, min(th_budget, th_target))
    best = 1
    for th in range(1, H + 1):
        if H % th == 0 and th <= th_cap:
            best = th
    return best


def _conv2_kernel(x_ref, w_ref, shift_ref, o_ref):
    # x_ref:     (H+2, W+2, C1p)   padded image of the current batch (resident)
    # w_ref:     (3, 3, C1p, C2p)  fused (3x3 + 1x1-center) weights, BN scale folded in
    # shift_ref: (1, C2p)          fused BN shift (beta - mean * scale), f32
    # o_ref:     (TH, W, C2p)      output row block (lane-dense: C2p % 128 == 0)
    TH, W, C2p = o_ref.shape
    C1p = x_ref.shape[-1]
    # first output row of this block == padded-input row of tap dh=0
    row0 = pl.program_id(1) * TH

    acc = jnp.zeros((TH * W, C2p), jnp.float32)
    # Fully unrolled 9-tap loop: each tap is a (TH*W, C1p) x (C1p, C2p) MXU matmul.
    for dh in range(3):
        for dw in range(3):
            xs = x_ref[pl.ds(row0 + dh, TH), pl.ds(dw, W), :]      # (TH, W, C1p)
            xs = xs.reshape(TH * W, C1p)
            acc = acc + jnp.dot(xs, w_ref[dh, dw],
                                preferred_element_type=jnp.float32)

    # Epilogue in f32: BN shift (scale already folded into w), then SiLU.
    y = acc + shift_ref[...]                                       # broadcast (1, C2p)
    # SiLU = y * sigmoid(y) = y / (1 + exp(-y)); approx reciprocal -> EUP slot (near-free).
    y = y * pl.reciprocal(1.0 + jnp.exp(-y), approx=True)
    o_ref[...] = y.reshape(TH, W, C2p).astype(o_ref.dtype)


@functools.partial(jax.jit, static_argnames=("eps", "compute_dtype", "out_dtype"))
def conv2_forward_nhwc(x_nhwc, w3x3, w1x1, gamma, beta, running_mean, running_var,
                       *, eps=1e-5, compute_dtype=jnp.float32, out_dtype=jnp.float32):
    """Conv2 forward, NHWC in / NHWC out (preferred path: no layout glue).

    x_nhwc: (B, H, W, C1);  w3x3: (C2, C1, 3, 3);  w1x1: (C2, C1, 1, 1)  (PyTorch OIHW).
    """
    B, H, W, C1 = x_nhwc.shape
    C2 = w3x3.shape[0]
    assert w3x3.shape == (C2, C1, 3, 3) and w1x1.shape == (C2, C1, 1, 1)

    # --- fuse the parallel 1x1 conv into the 3x3 center tap (Conv2.fuse_convs) ---
    w = w3x3.at[:, :, 1, 1].add(w1x1[:, :, 0, 0])                  # (C2, C1, 3, 3)

    # --- eval-mode BN: fold scale into weight output-channels, keep only shift ---
    bn_scale = gamma / jnp.sqrt(running_var + eps)                 # (C2,)
    bn_shift = beta - running_mean * bn_scale                      # (C2,)
    w = w * bn_scale[:, None, None, None]

    # --- lane/sublane padding: lane-dense C2 (unmasked stores), sublane-friendly C1 ---
    C1p = _round_up(C1, 8)
    C2p = _round_up(C2, 128)

    # weight (C2, C1, kh, kw) -> (kh, kw, C1p, C2p)
    w_k = jnp.transpose(w, (2, 3, 1, 0))                           # (3, 3, C1, C2)
    w_k = jnp.pad(w_k, ((0, 0), (0, 0), (0, C1p - C1), (0, C2p - C2))).astype(compute_dtype)
    shift = jnp.pad(bn_shift, (0, C2p - C2)).reshape(1, C2p).astype(jnp.float32)

    # single pad op: spatial "same" halo (+1 each side) and channel padding together
    x_p = jnp.pad(x_nhwc, ((0, 0), (1, 1), (1, 1), (0, C1p - C1))).astype(compute_dtype)

    in_itemsize = jnp.dtype(compute_dtype).itemsize
    out_itemsize = jnp.dtype(out_dtype).itemsize
    TH = _pick_row_tile(H, W, C1p, C2p, in_itemsize, out_itemsize)
    R = H // TH

    out = pl.pallas_call(
        _conv2_kernel,
        out_shape=jax.ShapeDtypeStruct((B, H, W, C2p), out_dtype),
        grid_spec=pltpu.PrefetchScalarGridSpec(
            num_scalar_prefetch=0,
            grid=(B, R),
            in_specs=[
                # full padded image of batch b; block index constant over r (inner axis)
                # -> Pallas skips the re-copy within a batch (fetched once per batch)
                pl.BlockSpec((None, H + 2, W + 2, C1p), lambda b, r: (b, 0, 0, 0)),
                # weights + shift resident across the whole grid
                pl.BlockSpec((3, 3, C1p, C2p), lambda b, r: (0, 0, 0, 0)),
                pl.BlockSpec((1, C2p), lambda b, r: (0, 0)),
            ],
            out_specs=pl.BlockSpec((None, TH, W, C2p), lambda b, r: (b, r, 0, 0)),
        ),
        compiler_params=pltpu.CompilerParams(
            # both axes are independent output tiles -> megacore shards them on v7x
            dimension_semantics=("parallel", "parallel"),
            # explicit, v7x-safe (64 MiB physical) VMEM budget; tiling keeps ~8 MiB headroom
            vmem_limit_bytes=32 * 1024 * 1024,
        ),
    )(x_p, w_k, shift)

    # NOTE: padded output channels carry SiLU(0) == 0 and are dropped here;
    # do not remove this slice.
    return out[:, :, :, :C2]


@functools.partial(jax.jit, static_argnames=("eps", "compute_dtype", "out_dtype"))
def conv2_forward_nchw(x_nchw, w3x3, w1x1, gamma, beta, running_mean, running_var,
                       *, eps=1e-5, compute_dtype=jnp.float32, out_dtype=jnp.float32):
    """PyTorch-facing NCHW wrapper (the two transposes are pure boundary glue;
    keep the model NHWC end-to-end and call conv2_forward_nhwc to avoid them)."""
    x_nhwc = jnp.transpose(x_nchw, (0, 2, 3, 1))
    y = conv2_forward_nhwc(x_nhwc, w3x3, w1x1, gamma, beta, running_mean, running_var,
                           eps=eps, compute_dtype=compute_dtype, out_dtype=out_dtype)
    return jnp.transpose(y, (0, 3, 1, 2))


def _reference(x_nchw, w3x3, w1x1, gamma, beta, running_mean, running_var, eps=1e-5):
    """Plain-JAX reference of Conv2.forward (eval-mode BN)."""
    dn = ("NCHW", "OIHW", "NCHW")
    y = lax.conv_general_dilated(x_nchw, w3x3, (1, 1), ((1, 1), (1, 1)),
                                 dimension_numbers=dn, precision=lax.Precision.HIGHEST)
    y = y + lax.conv_general_dilated(x_nchw, w1x1, (1, 1), ((0, 0), (0, 0)),
                                     dimension_numbers=dn, precision=lax.Precision.HIGHEST)
    scale = (gamma / jnp.sqrt(running_var + eps)).reshape(1, -1, 1, 1)
    shift = (beta - running_mean * gamma / jnp.sqrt(running_var + eps)).reshape(1, -1, 1, 1)
    y = y * scale + shift
    return y * jax.nn.sigmoid(y)


if __name__ == "__main__":
    key = jax.random.PRNGKey(0)
    B, C1, C2, H, W = 2, 4, 8, 16, 16

    ks = jax.random.split(key, 7)
    x = jax.random.normal(ks[0], (B, C1, H, W), dtype=jnp.float32)
    w3x3 = jax.random.normal(ks[1], (C2, C1, 3, 3), dtype=jnp.float32) * 0.1   # Conv2d(c1,c2,3) weight
    w1x1 = jax.random.normal(ks[2], (C2, C1, 1, 1), dtype=jnp.float32) * 0.1   # cv2 = Conv2d(c1,c2,1)
    gamma = 1.0 + 0.1 * jax.random.normal(ks[3], (C2,), dtype=jnp.float32)
    beta = 0.1 * jax.random.normal(ks[4], (C2,), dtype=jnp.float32)
    running_mean = 0.1 * jax.random.normal(ks[5], (C2,), dtype=jnp.float32)
    running_var = jnp.abs(jax.random.normal(ks[6], (C2,), dtype=jnp.float32)) + 0.5

    ref = _reference(x, w3x3, w1x1, gamma, beta, running_mean, running_var)

    # f32 operand path (default): only approximation is the EUP approx reciprocal in SiLU.
    out = conv2_forward_nchw(x, w3x3, w1x1, gamma, beta, running_mean, running_var)
    out = jax.block_until_ready(out)
    assert out.shape == (B, C2, H, W), out.shape
    assert jnp.allclose(out, ref, atol=1e-2, rtol=1e-2), "f32 path mismatch vs reference"

    # bf16 matmul-operand path (recommended on v6e/v7x): looser tolerance.
    out_bf16 = conv2_forward_nchw(x, w3x3, w1x1, gamma, beta, running_mean, running_var,
                                  compute_dtype=jnp.bfloat16)
    out_bf16 = jax.block_until_ready(out_bf16)
    assert jnp.allclose(out_bf16, ref, atol=1e-1, rtol=1e-1), "bf16 path mismatch vs reference"

    print("KERNEL_OK")
</pallas_src>

<mosaic_0001>
module attributes {stable_mosaic.version = 11 : i64} {
  func.func @_conv2_kernel(%arg0: i32, %arg1: i32, %arg2: memref<1x18x18x8xf32, #tpu.memory_space<vmem>>, %arg3: memref<3x3x8x128xf32, #tpu.memory_space<vmem>>, %arg4: memref<1x128xf32, #tpu.memory_space<vmem>>, %arg5: memref<1x16x16x128xf32, #tpu.memory_space<vmem>>) attributes {dimension_semantics = [#tpu.dimension_semantics<parallel>, #tpu.dimension_semantics<parallel>], iteration_bounds = array<i64: 2, 1>, scalar_prefetch = 0 : i64, scratch_operands = 0 : i64, tpu.core_type = #tpu.core_type<tc>, window_params = [{transform_indices = @transform_0, window_bounds = array<i64: 1, 18, 18, 8>}, {pipeline_mode = #tpu.pipeline_mode<synchronous>, transform_indices = @transform_1, window_bounds = array<i64: 3, 3, 8, 128>}, {pipeline_mode = #tpu.pipeline_mode<synchronous>, transform_indices = @transform_2, window_bounds = array<i64: 1, 128>}, {transform_indices = @transform_3, window_bounds = array<i64: 1, 16, 16, 128>}]} {
    %c16_i32 = arith.constant 16 : i32
    %0 = arith.muli %arg1, %c16_i32 : i32
    %cst = arith.constant 0.000000e+00 : f32
    %1 = vector.broadcast %cst : f32 to vector<256x128xf32>
    %c0_i32 = arith.constant 0 : i32
    %2 = arith.addi %0, %c0_i32 : i32
    %c0 = arith.constant 0 : index
    %3 = arith.index_cast %2 : i32 to index
    %c0_0 = arith.constant 0 : index
    %c0_1 = arith.constant 0 : index
    %4 = vector.load %arg2[%c0, %3, %c0_0, %c0_1] : memref<1x18x18x8xf32, #tpu.memory_space<vmem>>, vector<1x16x16x8xf32>
    %5 = vector.shape_cast %4 : vector<1x16x16x8xf32> to vector<16x16x8xf32>
    %6 = vector.shape_cast %5 : vector<16x16x8xf32> to vector<256x8xf32>
    %c0_2 = arith.constant 0 : index
    %c0_3 = arith.constant 0 : index
    %c0_4 = arith.constant 0 : index
    %c0_5 = arith.constant 0 : index
    %7 = vector.load %arg3[%c0_2, %c0_3, %c0_4, %c0_5] : memref<3x3x8x128xf32, #tpu.memory_space<vmem>>, vector<1x1x8x128xf32>
    %8 = vector.shape_cast %7 : vector<1x1x8x128xf32> to vector<8x128xf32>
    %cst_6 = arith.constant dense<0.000000e+00> : vector<256x128xf32>
    %9 = tpu.matmul %6, %8, %cst_6 {dimension_numbers = #tpu.dot_dimension_numbers<[1], [0], [0], [1], [0, 0, 1, 1], [], []>} : vector<256x8xf32>, vector<8x128xf32>, vector<256x128xf32> -> vector<256x128xf32>
    %10 = arith.addf %1, %9 : vector<256x128xf32>
    %c0_i32_7 = arith.constant 0 : i32
    %11 = arith.addi %0, %c0_i32_7 : i32
    %c0_8 = arith.constant 0 : index
    %12 = arith.index_cast %11 : i32 to index
    %c1 = arith.constant 1 : index
    %c0_9 = arith.constant 0 : index
    %13 = vector.load %arg2[%c0_8, %12, %c1, %c0_9] : memref<1x18x18x8xf32, #tpu.memory_space<vmem>>, vector<1x16x16x8xf32>
    %14 = vector.shape_cast %13 : vector<1x16x16x8xf32> to vector<16x16x8xf32>
    %15 = vector.shape_cast %14 : vector<16x16x8xf32> to vector<256x8xf32>
    %c0_10 = arith.constant 0 : index
    %c1_11 = arith.constant 1 : index
    %c0_12 = arith.constant 0 : index
    %c0_13 = arith.constant 0 : index
    %16 = vector.load %arg3[%c0_10, %c1_11, %c0_12, %c0_13] : memref<3x3x8x128xf32, #tpu.memory_space<vmem>>, vector<1x1x8x128xf32>
    %17 = vector.shape_cast %16 : vector<1x1x8x128xf32> to vector<8x128xf32>
    %cst_14 = arith.constant dense<0.000000e+00> : vector<256x128xf32>
    %18 = tpu.matmul %15, %17, %cst_14 {dimension_numbers = #tpu.dot_dimension_numbers<[1], [0], [0], [1], [0, 0, 1, 1], [], []>} : vector<256x8xf32>, vector<8x128xf32>, vector<256x128xf32> -> vector<256x128xf32>
    %19 = arith.addf %10, %18 : vector<256x128xf32>
    %c0_i32_15 = arith.constant 0 : i32
    %20 = arith.addi %0, %c0_i32_15 : i32
    %c0_16 = arith.constant 0 : index
    %21 = arith.index_cast %20 : i32 to index
    %c2 = arith.constant 2 : index
    %c0_17 = arith.constant 0 : index
    %22 = vector.load %arg2[%c0_16, %21, %c2, %c0_17] : memref<1x18x18x8xf32, #tpu.memory_space<vmem>>, vector<1x16x16x8xf32>
    %23 = vector.shape_cast %22 : vector<1x16x16x8xf32> to vector<16x16x8xf32>
    %24 = vector.shape_cast %23 : vector<16x16x8xf32> to vector<256x8xf32>
    %c0_18 = arith.constant 0 : index
    %c2_19 = arith.constant 2 : index
    %c0_20 = arith.constant 0 : index
    %c0_21 = arith.constant 0 : index
    %25 = vector.load %arg3[%c0_18, %c2_19, %c0_20, %c0_21] : memref<3x3x8x128xf32, #tpu.memory_space<vmem>>, vector<1x1x8x128xf32>
    %26 = vector.shape_cast %25 : vector<1x1x8x128xf32> to vector<8x128xf32>
    %cst_22 = arith.constant dense<0.000000e+00> : vector<256x128xf32>
    %27 = tpu.matmul %24, %26, %cst_22 {dimension_numbers = #tpu.dot_dimension_numbers<[1], [0], [0], [1], [0, 0, 1, 1], [], []>} : vector<256x8xf32>, vector<8x128xf32>, vector<256x128xf32> -> vector<256x128xf32>
    %28 = arith.addf %19, %27 : vector<256x128xf32>
    %c1_i32 = arith.constant 1 : i32
    %29 = arith.addi %0, %c1_i32 : i32
    %c0_23 = arith.constant 0 : index
    %30 = arith.index_cast %29 : i32 to index
    %c0_24 = arith.constant 0 : index
    %c0_25 = arith.constant 0 : index
    %31 = vector.load %arg2[%c0_23, %30, %c0_24, %c0_25] : memref<1x18x18x8xf32, #tpu.memory_space<vmem>>, vector<1x16x16x8xf32>
    %32 = vector.shape_cast %31 : vector<1x16x16x8xf32> to vector<16x16x8xf32>
    %33 = vector.shape_cast %32 : vector<16x16x8xf32> to vector<256x8xf32>
    %c1_26 = arith.constant 1 : index
    %c0_27 = arith.constant 0 : index
    %c0_28 = arith.constant 0 : index
    %c0_29 = arith.constant 0 : index
    %34 = vector.load %arg3[%c1_26, %c0_27, %c0_28, %c0_29] : memref<3x3x8x128xf32, #tpu.memory_space<vmem>>, vector<1x1x8x128xf32>
    %35 = vector.shape_cast %34 : vector<1x1x8x128xf32> to vector<8x128xf32>
    %cst_30 = arith.constant dense<0.000000e+00> : vector<256x128xf32>
    %36 = tpu.matmul %33, %35, %cst_30 {dimension_numbers = #tpu.dot_dimension_numbers<[1], [0], [0], [1], [0, 0, 1, 1], [], []>} : vector<256x8xf32>, vector<8x128xf32>, vector<256x128xf32> -> vector<256x128xf32>
    %37 = arith.addf %28, %36 : vector<256x128xf32>
    %c1_i32_31 = arith.constant 1 : i32
    %38 = arith.addi %0, %c1_i32_31 : i32
    %c0_32 = arith.constant 0 : index
    %39 = arith.index_cast %38 : i32 to index
    %c1_33 = arith.constant 1 : index
    %c0_34 = arith.constant 0 : index
    %40 = vector.load %arg2[%c0_32, %39, %c1_33, %c0_34] : memref<1x18x18x8xf32, #tpu.memory_space<vmem>>, vector<1x16x16x8xf32>
    %41 = vector.shape_cast %40 : vector<1x16x16x8xf32> to vector<16x16x8xf32>
    %42 = vector.shape_cast %41 : vector<16x16x8xf32> to vector<256x8xf32>
    %c1_35 = arith.constant 1 : index
    %c1_36 = arith.constant 1 : index
    %c0_37 = arith.constant 0 : index
    %c0_38 = arith.constant 0 : index
    %43 = vector.load %arg3[%c1_35, %c1_36, %c0_37, %c0_38] : memref<3x3x8x128xf32, #tpu.memory_space<vmem>>, vector<1x1x8x128xf32>
    %44 = vector.shape_cast %43 : vector<1x1x8x128xf32> to vector<8x128xf32>
    %cst_39 = arith.constant dense<0.000000e+00> : vector<256x128xf32>
    %45 = tpu.matmul %42, %44, %cst_39 {dimension_numbers = #tpu.dot_dimension_numbers<[1], [0], [0], [1], [0, 0, 1, 1], [], []>} : vector<256x8xf32>, vector<8x128xf32>, vector<256x128xf32> -> vector<256x128xf32>
    %46 = arith.addf %37, %45 : vector<256x128xf32>
    %c1_i32_40 = arith.constant 1 : i32
    %47 = arith.addi %0, %c1_i32_40 : i32
    %c0_41 = arith.constant 0 : index
    %48 = arith.index_cast %47 : i32 to index
    %c2_42 = arith.constant 2 : index
    %c0_43 = arith.constant 0 : index
    %49 = vector.load %arg2[%c0_41, %48, %c2_42, %c0_43] : memref<1x18x18x8xf32, #tpu.memory_space<vmem>>, vector<1x16x16x8xf32>
    %50 = vector.shape_cast %49 : vector<1x16x16x8xf32> to vector<16x16x8xf32>
    %51 = vector.shape_cast %50 : vector<16x16x8xf32> to vector<256x8xf32>
    %c1_44 = arith.constant 1 : index
    %c2_45 = arith.constant 2 : index
    %c0_46 = arith.constant 0 : index
    %c0_47 = arith.constant 0 : index
    %52 = vector.load %arg3[%c1_44, %c2_45, %c0_46, %c0_47] : memref<3x3x8x128xf32, #tpu.memory_space<vmem>>, vector<1x1x8x128xf32>
    %53 = vector.shape_cast %52 : vector<1x1x8x128xf32> to vector<8x128xf32>
    %cst_48 = arith.constant dense<0.000000e+00> : vector<256x128xf32>
    %54 = tpu.matmul %51, %53, %cst_48 {dimension_numbers = #tpu.dot_dimension_numbers<[1], [0], [0], [1], [0, 0, 1, 1], [], []>} : vector<256x8xf32>, vector<8x128xf32>, vector<256x128xf32> -> vector<256x128xf32>
    %55 = arith.addf %46, %54 : vector<256x128xf32>
    %c2_i32 = arith.constant 2 : i32
    %56 = arith.addi %0, %c2_i32 : i32
    %c0_49 = arith.constant 0 : index
    %57 = arith.index_cast %56 : i32 to index
    %c0_50 = arith.constant 0 : index
    %c0_51 = arith.constant 0 : index
    %58 = vector.load %arg2[%c0_49, %57, %c0_50, %c0_51] : memref<1x18x18x8xf32, #tpu.memory_space<vmem>>, vector<1x16x16x8xf32>
    %59 = vector.shape_cast %58 : vector<1x16x16x8xf32> to vector<16x16x8xf32>
    %60 = vector.shape_cast %59 : vector<16x16x8xf32> to vector<256x8xf32>
    %c2_52 = arith.constant 2 : index
    %c0_53 = arith.constant 0 : index
    %c0_54 = arith.constant 0 : index
    %c0_55 = arith.constant 0 : index
    %61 = vector.load %arg3[%c2_52, %c0_53, %c0_54, %c0_55] : memref<3x3x8x128xf32, #tpu.memory_space<vmem>>, vector<1x1x8x128xf32>
    %62 = vector.shape_cast %61 : vector<1x1x8x128xf32> to vector<8x128xf32>
    %cst_56 = arith.constant dense<0.000000e+00> : vector<256x128xf32>
    %63 = tpu.matmul %60, %62, %cst_56 {dimension_numbers = #tpu.dot_dimension_numbers<[1], [0], [0], [1], [0, 0, 1, 1], [], []>} : vector<256x8xf32>, vector<8x128xf32>, vector<256x128xf32> -> vector<256x128xf32>
    %64 = arith.addf %55, %63 : vector<256x128xf32>
    %c2_i32_57 = arith.constant 2 : i32
    %65 = arith.addi %0, %c2_i32_57 : i32
    %c0_58 = arith.constant 0 : index
    %66 = arith.index_cast %65 : i32 to index
    %c1_59 = arith.constant 1 : index
    %c0_60 = arith.constant 0 : index
    %67 = vector.load %arg2[%c0_58, %66, %c1_59, %c0_60] : memref<1x18x18x8xf32, #tpu.memory_space<vmem>>, vector<1x16x16x8xf32>
    %68 = vector.shape_cast %67 : vector<1x16x16x8xf32> to vector<16x16x8xf32>
    %69 = vector.shape_cast %68 : vector<16x16x8xf32> to vector<256x8xf32>
    %c2_61 = arith.constant 2 : index
    %c1_62 = arith.constant 1 : index
    %c0_63 = arith.constant 0 : index
    %c0_64 = arith.constant 0 : index
    %70 = vector.load %arg3[%c2_61, %c1_62, %c0_63, %c0_64] : memref<3x3x8x128xf32, #tpu.memory_space<vmem>>, vector<1x1x8x128xf32>
    %71 = vector.shape_cast %70 : vector<1x1x8x128xf32> to vector<8x128xf32>
    %cst_65 = arith.constant dense<0.000000e+00> : vector<256x128xf32>
    %72 = tpu.matmul %69, %71, %cst_65 {dimension_numbers = #tpu.dot_dimension_numbers<[1], [0], [0], [1], [0, 0, 1, 1], [], []>} : vector<256x8xf32>, vector<8x128xf32>, vector<256x128xf32> -> vector<256x128xf32>
    %73 = arith.addf %64, %72 : vector<256x128xf32>
    %c2_i32_66 = arith.constant 2 : i32
    %74 = arith.addi %0, %c2_i32_66 : i32
    %c0_67 = arith.constant 0 : index
    %75 = arith.index_cast %74 : i32 to index
    %c2_68 = arith.constant 2 : index
    %c0_69 = arith.constant 0 : index
    %76 = vector.load %arg2[%c0_67, %75, %c2_68, %c0_69] : memref<1x18x18x8xf32, #tpu.memory_space<vmem>>, vector<1x16x16x8xf32>
    %77 = vector.shape_cast %76 : vector<1x16x16x8xf32> to vector<16x16x8xf32>
    %78 = vector.shape_cast %77 : vector<16x16x8xf32> to vector<256x8xf32>
    %c2_70 = arith.constant 2 : index
    %c2_71 = arith.constant 2 : index
    %c0_72 = arith.constant 0 : index
    %c0_73 = arith.constant 0 : index
    %79 = vector.load %arg3[%c2_70, %c2_71, %c0_72, %c0_73] : memref<3x3x8x128xf32, #tpu.memory_space<vmem>>, vector<1x1x8x128xf32>
    %80 = vector.shape_cast %79 : vector<1x1x8x128xf32> to vector<8x128xf32>
    %cst_74 = arith.constant dense<0.000000e+00> : vector<256x128xf32>
    %81 = tpu.matmul %78, %80, %cst_74 {dimension_numbers = #tpu.dot_dimension_numbers<[1], [0], [0], [1], [0, 0, 1, 1], [], []>} : vector<256x8xf32>, vector<8x128xf32>, vector<256x128xf32> -> vector<256x128xf32>
    %82 = arith.addf %73, %81 : vector<256x128xf32>
    %c0_75 = arith.constant 0 : index
    %c0_76 = arith.constant 0 : index
    %83 = vector.load %arg4[%c0_75, %c0_76] : memref<1x128xf32, #tpu.memory_space<vmem>>, vector<1x128xf32>
    %84 = vector.broadcast %83 : vector<1x128xf32> to vector<256x128xf32>
    %85 = arith.addf %82, %84 : vector<256x128xf32>
    %cst_77 = arith.constant 0.000000e+00 : f32
    %86 = vector.broadcast %cst_77 : f32 to vector<256x128xf32>
    %87 = arith.subf %86, %85 : vector<256x128xf32>
    %88 = math.exp %87 : vector<256x128xf32>
    %cst_78 = arith.constant 1.000000e+00 : f32
    %89 = vector.broadcast %cst_78 : f32 to vector<256x128xf32>
    %90 = arith.addf %89, %88 : vector<256x128xf32>
    %91 = tpu.reciprocal %90 {approx = true} : vector<256x128xf32> -> vector<256x128xf32>
    %92 = arith.mulf %85, %91 : vector<256x128xf32>
    %93 = vector.shape_cast %92 : vector<256x128xf32> to vector<16x16x128xf32>
    %c0_79 = arith.constant 0 : index
    %c0_80 = arith.constant 0 : index
    %c0_81 = arith.constant 0 : index
    %c0_82 = arith.constant 0 : index
    %94 = vector.load %arg5[%c0_79, %c0_80, %c0_81, %c0_82] : memref<1x16x16x128xf32, #tpu.memory_space<vmem>>, vector<1x16x16x128xf32>
    %95 = vector.shape_cast %94 : vector<1x16x16x128xf32> to vector<16x16x128xf32>
    %96 = vector.shape_cast %93 : vector<16x16x128xf32> to vector<1x16x16x128xf32>
    tpu.vector_store %arg5[%c0_79, %c0_80, %c0_81, %c0_82], %96 {strides = array<i32>} : memref<1x16x16x128xf32, #tpu.memory_space<vmem>>, vector<1x16x16x128xf32>,
    return
  }
  func.func @transform_0(%arg0: i32, %arg1: i32) -> (i32, i32, i32, i32) {
    %c0_i32 = arith.constant 0 : i32
    %c0_i32_0 = arith.constant 0 : i32
    %c0_i32_1 = arith.constant 0 : i32
    %c0_i32_2 = arith.constant 0 : i32
    return %arg0, %c0_i32, %c0_i32_0, %c0_i32_1 : i32, i32, i32, i32
  }
  func.func @transform_1(%arg0: i32, %arg1: i32) -> (i32, i32, i32, i32) {
    %c0_i32 = arith.constant 0 : i32
    %c0_i32_0 = arith.constant 0 : i32
    %c0_i32_1 = arith.constant 0 : i32
    %c0_i32_2 = arith.constant 0 : i32
    %c0_i32_3 = arith.constant 0 : i32
    return %c0_i32, %c0_i32_0, %c0_i32_1, %c0_i32_2 : i32, i32, i32, i32
  }
  func.func @transform_2(%arg0: i32, %arg1: i32) -> (i32, i32) {
    %c0_i32 = arith.constant 0 : i32
    %c0_i32_0 = arith.constant 0 : i32
    %c0_i32_1 = arith.constant 0 : i32
    return %c0_i32, %c0_i32_0 : i32, i32
  }
  func.func @transform_3(%arg0: i32, %arg1: i32) -> (i32, i32, i32, i32) {
    %c0_i32 = arith.constant 0 : i32
    %c0_i32_0 = arith.constant 0 : i32
    %c0_i32_1 = arith.constant 0 : i32
    return %arg0, %arg1, %c0_i32, %c0_i32_0 : i32, i32, i32, i32
  }
}

</mosaic_0001>

<bundles_post_ra>
// kernel: conv2_forward_nhwc.1
= control target key start
LH: loop header
LB: loop body
LE: loop exit
PB: predicated region body
PF: predicated region fallthrough
CT: control target
= control target key end

     0   :  { %s5686_s12 = smov 0   ;;  %s5688_s13 = smov 0   ;;  %s6847_s0 = inlined_call_operand.vmem [shape: f32[2,18,18,8], index: 0, kind: input, shape index: {}]   ;;  %s6848_s1 = inlined_call_operand.vmem [shape: f32[3,3,8,128], index: 1, kind: input, shape index: {}]   ;;  %s6849_s2 = inlined_call_operand.vmem [shape: f32[1,128], index: 2, kind: input, shape index: {}]   ;;  %s6850_s3 = inlined_call_operand.vmem [shape: f32[2,16,16,128], index: 3, kind: output, shape index: {}]  }
   0x1   :  { %s5690_s14 = smov 0  }
   0x2 LB: > { %s25_s15 = sadd.s32 1, %s5660_s13  ;;  %p3988_p0 = scmp.ge.s32.totalorder %s5664_s14, 1  ;;  %s5664_s14 = sphi %s5690_s14, %s13_s14   ;;  %s5660_s13 = sphi %s5688_s13, %s6961_s13   ;;  %s5656_s12 = sphi %s5686_s12, %s6960_s12  }
   0x3   : > { %p27_p1 = scmp.ge.s32.totalorder %s25_s15, 2  ;;  %p151_p2 = scmp.lt.s32.totalorder %s5664_s14, 3 }
   0x5   : > { %s6963_s15 = smov (%p27_p1, %s25_s15), 0  ;;  %p152_p3 = pnand %p3988_p0, %p151_p2 }
   0x7   : > { %155 = sbr.rel (%p152_p3) target bundleno = 559 (0x22f), region = 32 }
   0xe   : > { %v3992_v0 = vld [vmem:[%s6848_s1 + $0x8] sm:$0xff]  ;;  %v5710_v1 = vld [vmem:[%s6848_s1 + $0x20] sm:$0xff]  ;;  %p180_p4 = scmp.lt.s32.totalorder %s5656_s12, 1  ;;  %vm266_vm0 = vcmask 64512   ;;  %v4317_v9 = vld [vmem:[%s6848_s1 + $0x30] sm:$0xff] }
   0xf   : > { %v231_v2 = vld [vmem:[%s6848_s1] sm:$0xff]  ;;  %4781 = vmatprep.subr.mxu1 %v3992_v0  ;;  %4981 = vmatprep.subr.mxu0 %v5710_v1  ;;  %v4252_v3 = vld [vmem:[%s6848_s1 + $0x28] sm:$0xff]  ;;  %v5745_v10 = vld [vmem:[%s6848_s1 + $0x10] sm:$0xff] }
  0x10   : > { %4782 = vmatpush3.msra.mxu1 %v3992_v0  ;;  %4982 = vmatpush3.msra.mxu0 %v5710_v1  ;;  %s6965_s12 = smov (!%p180_p4, %s5656_s12), 1  ;;  %v5860_v28 = vld [vmem:[%s6848_s1 + $0x38] sm:$0xff] }
  0x11   : > { %4831 = vmatprep.subr.mxu1 %v231_v2  ;;  %5031 = vmatprep.subr.mxu0 %v4252_v3  ;;  %s5489_s24 = smul.u32 432, %s6965_s12  ;;  %v6021_v61 = vld [vmem:[%s6848_s1 + $0x18] sm:$0xff]  ;;  %s4483_s17 = sshll.u32 %s6965_s12, 8 }
  0x12   : > { %s6703_s19 = scalar_lea.vmem %s6850_s3, %s4483_s17 }
  0x13   : > { %s5726_s27 = scalar_lea.vmem %s6847_s0, %s5489_s24 }
  0x14   : > { %v232_v4 = vld [vmem:[%s5726_s27 + $0x1] sm:$0xff]  ;;  %v4155_v5 = vld [vmem:[%s5726_s27 + $0x19] sm:$0xff]  ;;  %v233_v6 = vld [vmem:[%s5726_s27 + $0x9] sm:$0xff] }
  0x15   : > { %4783 = vmatprep.mubr.msk.f32.mxu1 %vm266_vm0, %v232_v4  ;;  %4983 = vmatprep.mubr.msk.f32.mxu0 %vm266_vm0, %v4155_v5  ;;  %v4156_v7 = vld [vmem:[%s5726_s27 + $0x21] sm:$0xff]  ;;  %v5735_v8 = vld [vmem:[%s5726_s27 + $0x31] sm:$0xff]  ;;  %v5748_v11 = vld [vmem:[%s5726_s27 + $0x39] sm:$0xff] }
  0x16   : > { %4784 = vmatmul.mubr.msk.f32.vlgmr.msra.gmra.mrb[0].mxu1 %vm266_vm0, %v233_v6  ;;  %4984 = vmatmul.mubr.msk.f32.vlgmr.msra.gmra.mrb[0].mxu0 %vm266_vm0, %v4156_v7  ;;  %v5754_v12 = vld [vmem:[%s5726_s27 + $0x49] sm:$0xff]  ;;  %v5765_v13 = vld [vmem:[%s5726_s27 + $0x51] sm:$0xff]  ;;  %v5768_v14 = vld [vmem:[%s5726_s27 + $0x61] sm:$0xff] }
  0x17   : > { %4832 = vmatpush3.msra.mxu1 %v231_v2  ;;  %5032 = vmatpush3.msra.mxu0 %v4252_v3  ;;  %v5779_v15 = vld [vmem:[%s5726_s27 + $0x69] sm:$0xff]  ;;  %v5782_v16 = vld [vmem:[%s5726_s27 + $0x79] sm:$0xff]  ;;  %v5793_v17 = vld [vmem:[%s5726_s27 + $0x81] sm:$0xff] }
  0x18   : > { %4786 = vmatprep.mubr.msk.f32.mxu1 %vm266_vm0, %v4155_v5  ;;  %4986 = vmatprep.mubr.msk.f32.mxu0 %vm266_vm0, %v5735_v8  ;;  %v5796_v18 = vld [vmem:[%s5726_s27 + $0x91] sm:$0xff]  ;;  %v5807_v19 = vld [vmem:[%s5726_s27 + $0x99] sm:$0xff]  ;;  %v5810_v20 = vld [vmem:[%s5726_s27 + $0xa9] sm:$0xff] }
  0x19   : > { %5081 = vmatprep.subr.mxu0 %v4317_v9  ;;  %4881 = vmatprep.subr.mxu1 %v5745_v10  ;;  %v5821_v21 = vld [vmem:[%s5726_s27 + $0xb1] sm:$0xff]  ;;  %v5824_v22 = vld [vmem:[%s5726_s27 + $0xc1] sm:$0xff]  ;;  %v5835_v23 = vld [vmem:[%s5726_s27 + $0xc9] sm:$0xff] }
  0x1a   : > { %4787 = vmatmul.mubr.msk.f32.gmra.mrb[2].mxu1 %vm266_vm0, %v4156_v7  ;;  %4987 = vmatmul.mubr.msk.f32.gmra.mrb[2].mxu0 %vm266_vm0, %v5748_v11  ;;  %v5838_v24 = vld [vmem:[%s5726_s27 + $0x1a] sm:$0xff]  ;;  %v5849_v25 = vld [vmem:[%s5726_s27 + $0x22] sm:$0xff]  ;;  %v5855_v27 = vld [vmem:[%s5726_s27 + $0x32] sm:$0xff] }
  0x1b   : > { %4789 = vmatprep.mubr.msk.f32.mxu1 %vm266_vm0, %v5735_v8  ;;  %4989 = vmatprep.mubr.msk.f32.mxu0 %vm266_vm0, %v5754_v12  ;;  %v5852_v26 = vld [vmem:[%s5726_s27 + $0xd9] sm:$0xff]  ;;  %v5869_v29 = vld [vmem:[%s5726_s27 + $0xe1] sm:$0xff]  ;;  %v5877_v31 = vld [vmem:[%s5726_s27 + $0xf1] sm:$0xff] }
  0x1c   : > { %6896 = vst [vmem:[#allocation2_spill] sm:$0xff] %v5869_v29  ;;  %v5872_v30 = vld [vmem:[%s5726_s27 + $0x3a] sm:$0xff]  ;;  %6897 = vst [vmem:[#allocation3_spill] sm:$0xff] %v5877_v31  ;;  %v5880_v32 = vld [vmem:[%s5726_s27 + $0x4a] sm:$0xff] }
  0x1d   : > { %v5892_v33 = vld [vmem:[%s5726_s27 + $0xf9] sm:$0xff]  ;;  %v5898_v35 = vld [vmem:[%s5726_s27 + $0x109] sm:$0xff]  ;;  %v5912_v37 = vld [vmem:[%s5726_s27 + $0x111] sm:$0xff] }
  0x1e   : > { %4790 = vmatmul.mubr.msk.f32.gmra.mrb[4].mxu1 %vm266_vm0, %v5748_v11  ;;  %4990 = vmatmul.mubr.msk.f32.gmra.mrb[4].mxu0 %vm266_vm0, %v5765_v13  ;;  %6898 = vst [vmem:[#allocation4_spill] sm:$0xff] %v5892_v33  ;;  %v5895_v34 = vld [vmem:[%s5726_s27 + $0x52] sm:$0xff]  ;;  %6899 = vst [vmem:[#allocation5_spill] sm:$0xff] %v5898_v35  ;;  %v5901_v36 = vld [vmem:[%s5726_s27 + $0x62] sm:$0xff] }
  0x1f   : > { %4792 = vmatprep.mubr.msk.f32.mxu1 %vm266_vm0, %v5754_v12  ;;  %4992 = vmatprep.mubr.msk.f32.mxu0 %vm266_vm0, %v5768_v14  ;;  %6900 = vst [vmem:[#allocation6_spill] sm:$0xff] %v5912_v37  ;;  %v5915_v38 = vld [vmem:[%s5726_s27 + $0x6a] sm:$0xff]  ;;  %v5918_v39 = vld [vmem:[%s5726_s27 + $0x121] sm:$0xff]  ;;  %v5938_v43 = vld [vmem:[%s5726_s27 + $0x139] sm:$0xff] }
  0x20   : > { %6901 = vst [vmem:[#allocation7_spill] sm:$0xff] %v5918_v39  ;;  %v5921_v40 = vld [vmem:[%s5726_s27 + $0x7a] sm:$0xff]  ;;  %v5932_v41 = vld [vmem:[%s5726_s27 + $0x129] sm:$0xff]  ;;  %6903 = vst [vmem:[#allocation9_spill] sm:$0xff] %v5938_v43 }
  0x21   : > { %6902 = vst [vmem:[#allocation8_spill] sm:$0xff] %v5932_v41  ;;  %v5935_v42 = vld [vmem:[%s5726_s27 + $0x82] sm:$0xff]  ;;  %v5941_v44 = vld [vmem:[%s5726_s27 + $0x92] sm:$0xff]  ;;  %v5955_v46 = vld [vmem:[%s5726_s27 + $0x9a] sm:$0xff] }
  0x22   : > { %4793 = vmatmul.mubr.msk.f32.gmra.mrb[6].mxu1 %vm266_vm0, %v5765_v13  ;;  %4993 = vmatmul.mubr.msk.f32.gmra.mrb[6].mxu0 %vm266_vm0, %v5779_v15  ;;  %v5952_v45 = vld [vmem:[%s5726_s27 + $0x141] sm:$0xff]  ;;  %v5958_v47 = vld [vmem:[%s5726_s27 + $0x151] sm:$0xff]  ;;  %v5972_v49 = vld [vmem:[%s5726_s27 + $0x159] sm:$0xff] }
  0x23   : > { %4795 = vmatprep.mubr.msk.f32.mxu1 %vm266_vm0, %v5768_v14  ;;  %4995 = vmatprep.mubr.msk.f32.mxu0 %vm266_vm0, %v5782_v16  ;;  %6904 = vst [vmem:[#allocation10_spill] sm:$0xff] %v5952_v45  ;;  %6905 = vst [vmem:[#allocation11_spill] sm:$0xff] %v5958_v47  ;;  %v5961_v48 = vld [vmem:[%s5726_s27 + $0xaa] sm:$0xff]  ;;  %v5975_v50 = vld [vmem:[%s5726_s27 + $0xb2] sm:$0xff] }
  0x24   : > { %6906 = vst [vmem:[#allocation12_spill] sm:$0xff] %v5972_v49  ;;  %v5978_v51 = vld [vmem:[%s5726_s27 + $0x169] sm:$0xff]  ;;  %v5992_v53 = vld [vmem:[%s5726_s27 + $0x171] sm:$0xff]  ;;  %v199_v55 = vld [vmem:[%s5726_s27] sm:$0xff] }
  0x25   : > { %6907 = vst [vmem:[#allocation13_spill] sm:$0xff] %v5978_v51  ;;  %v5981_v52 = vld [vmem:[%s5726_s27 + $0xc2] sm:$0xff]  ;;  %6908 = vst [vmem:[#allocation14_spill] sm:$0xff] %v5992_v53  ;;  %v5995_v54 = vld [vmem:[%s5726_s27 + $0xca] sm:$0xff] }
  0x26   : > { %4796 = vmatmul.mubr.msk.f32.gmra.mrb[8].mxu1 %vm266_vm0, %v5779_v15  ;;  %4996 = vmatmul.mubr.msk.f32.gmra.mrb[8].mxu0 %vm266_vm0, %v5793_v17  ;;  %v5999_v56 = vld [vmem:[%s5726_s27 + $0xda] sm:$0xff]  ;;  %v200_v57 = vld [vmem:[%s5726_s27 + $0x8] sm:$0xff]  ;;  %v6016_v60 = vld [vmem:[%s5726_s27 + $0xf2] sm:$0xff] }
  0x27   : > { %4798 = vmatprep.mubr.msk.f32.mxu1 %vm266_vm0, %v5782_v16  ;;  %4998 = vmatprep.mubr.msk.f32.mxu0 %vm266_vm0, %v5796_v18  ;;  %v6010_v58 = vld [vmem:[%s5726_s27 + $0xe2] sm:$0xff]  ;;  %v6013_v59 = vld [vmem:[%s5726_s27 + $0x18] sm:$0xff]  ;;  %v6038_v0 = vld [vmem:[%s5726_s27 + $0x30] sm:$0xff] }
  0x28   : > { %6909 = vst [vmem:[#allocation15_spill] sm:$0xff] %v6013_v59  ;;  %v6030_v62 = vld [vmem:[%s5726_s27 + $0x20] sm:$0xff]  ;;  %6911 = vst [vmem:[#allocation17_spill] sm:$0xff] %v6038_v0  ;;  %v6041_v2 = vld [vmem:[%s5726_s27 + $0x10a] sm:$0xff] }
  0x29   : > { %6910 = vst [vmem:[#allocation16_spill] sm:$0xff] %v6030_v62  ;;  %v6033_v63 = vld [vmem:[%s5726_s27 + $0xfa] sm:$0xff]  ;;  %v6056_v4 = vld [vmem:[%s5726_s27 + $0x112] sm:$0xff]  ;;  %v6059_v5 = vld [vmem:[%s5726_s27 + $0x48] sm:$0xff] }
  0x2a   : > { %4799 = vmatmul.mubr.msk.f32.gmra.mrb[10].mxu1 %vm266_vm0, %v5793_v17  ;;  %4999 = vmatmul.mubr.msk.f32.gmra.mrb[10].mxu0 %vm266_vm0, %v5807_v19  ;;  %v6053_v3 = vld [vmem:[%s5726_s27 + $0x38] sm:$0xff]  ;;  %6913 = vst [vmem:[#allocation19_spill] sm:$0xff] %v6059_v5  ;;  %v6062_v6 = vld [vmem:[%s5726_s27 + $0x122] sm:$0xff]  ;;  %v6073_v7 = vld [vmem:[%s5726_s27 + $0x50] sm:$0xff] }
  0x2b   : > { %4801 = vmatprep.mubr.msk.f32.mxu1 %vm266_vm0, %v5796_v18  ;;  %5001 = vmatprep.mubr.msk.f32.mxu0 %vm266_vm0, %v5810_v20  ;;  %6912 = vst [vmem:[#allocation18_spill] sm:$0xff] %v6053_v3  ;;  %6914 = vst [vmem:[#allocation20_spill] sm:$0xff] %v6073_v7 }
  0x2e   : > { %4802 = vmatmul.mubr.msk.f32.gmra.mrb[12].mxu1 %vm266_vm0, %v5807_v19  ;;  %5002 = vmatmul.mubr.msk.f32.gmra.mrb[12].mxu0 %vm266_vm0, %v5821_v21 }
  0x2f   : > { %4804 = vmatprep.mubr.msk.f32.mxu1 %vm266_vm0, %v5810_v20  ;;  %5004 = vmatprep.mubr.msk.f32.mxu0 %vm266_vm0, %v5824_v22 }
  0x32   : > { %4805 = vmatmul.mubr.msk.f32.gmra.mrb[14].mxu1 %vm266_vm0, %v5821_v21  ;;  %5005 = vmatmul.mubr.msk.f32.gmra.mrb[14].mxu0 %vm266_vm0, %v5835_v23 }
  0x33   : > { %4807 = vmatprep.mubr.msk.f32.mxu1 %vm266_vm0, %v5824_v22  ;;  %5033 = vmatprep.mubr.msk.f32.mxu0 %vm266_vm0, %v5838_v24 }
  0x36   : > { %4808 = vmatmul.mubr.msk.f32.gmra.mrb[16].mxu1 %vm266_vm0, %v5835_v23  ;;  %5034 = vmatmul.mubr.msk.f32.vlgmr.msra.gmra.mrb[0].mxu0 %vm266_vm0, %v5849_v25 }
  0x37   : > { %5082 = vmatpush3.msra.mxu0 %v4317_v9  ;;  %4810 = vmatprep.mubr.msk.f32.mxu1 %vm266_vm0, %v5852_v26  ;;  %v6076_v9 = vld [vmem:[%s5726_s27 + $0x12a] sm:$0xff] }
  0x38   : > { %5036 = vmatprep.mubr.msk.f32.mxu0 %vm266_vm0, %v5855_v27  ;;  %5131 = vmatprep.subr.mxu0 %v5860_v28 }
  0x3a   : > { %4811 = vmatmul.mubr.msk.f32.gmra.mrb[18].mxu1 %vm266_vm0, %v5869_v29  ;;  %5037 = vmatmul.mubr.msk.f32.gmra.mrb[2].mxu0 %vm266_vm0, %v5872_v30  ;;  %v6173_v29 = vld [vmem:[%s5726_s27 + $0xd8] sm:$0xff] }
  0x3b   : > { %4813 = vmatprep.mubr.msk.f32.mxu1 %vm266_vm0, %v5877_v31  ;;  %5039 = vmatprep.mubr.msk.f32.mxu0 %vm266_vm0, %v5880_v32  ;;  %v6156_v31 = vld [vmem:[%s5726_s27 + $0x18a] sm:$0xff] }
  0x3c   : > { %6925 = vst [vmem:[#allocation31_spill] sm:$0xff] %v6156_v31 }
  0x3e   : > { %4814 = vmatmul.mubr.msk.f32.gmra.mrb[20].mxu1 %vm266_vm0, %v5892_v33  ;;  %5040 = vmatmul.mubr.msk.f32.gmra.mrb[4].mxu0 %vm266_vm0, %v5895_v34  ;;  %v6142_v33 = vld [vmem:[%s5726_s27 + $0x182] sm:$0xff] }
  0x3f   : > { %4816 = vmatprep.mubr.msk.f32.mxu1 %vm266_vm0, %v5898_v35  ;;  %5042 = vmatprep.mubr.msk.f32.mxu0 %vm266_vm0, %v5901_v36  ;;  %v6139_v35 = vld [vmem:[%s5726_s27 + $0xa8] sm:$0xff]  ;;  %6923 = vst [vmem:[#allocation29_spill] sm:$0xff] %v6142_v33 }
  0x40   : > { %6922 = vst [vmem:[#allocation28_spill] sm:$0xff] %v6139_v35 }
  0x42   : > { %4817 = vmatmul.mubr.msk.f32.gmra.mrb[22].mxu1 %vm266_vm0, %v5912_v37  ;;  %5043 = vmatmul.mubr.msk.f32.gmra.mrb[6].mxu0 %vm266_vm0, %v5915_v38  ;;  %v6136_v37 = vld [vmem:[%s5726_s27 + $0x172] sm:$0xff] }
  0x43   : > { %4819 = vmatprep.mubr.msk.f32.mxu1 %vm266_vm0, %v5918_v39  ;;  %5045 = vmatprep.mubr.msk.f32.mxu0 %vm266_vm0, %v5921_v40  ;;  %v6133_v39 = vld [vmem:[%s5726_s27 + $0x98] sm:$0xff]  ;;  %6921 = vst [vmem:[#allocation27_spill] sm:$0xff] %v6136_v37 }
  0x44   : > { %6920 = vst [vmem:[#allocation26_spill] sm:$0xff] %v6133_v39 }
  0x46   : > { %4820 = vmatmul.mubr.msk.f32.gmra.mrb[24].mxu1 %vm266_vm0, %v5932_v41  ;;  %5046 = vmatmul.mubr.msk.f32.gmra.mrb[8].mxu0 %vm266_vm0, %v5935_v42  ;;  %v6122_v41 = vld [vmem:[%s5726_s27 + $0x16a] sm:$0xff] }
  0x47   : > { %4822 = vmatprep.mubr.msk.f32.mxu1 %vm266_vm0, %v5938_v43  ;;  %5048 = vmatprep.mubr.msk.f32.mxu0 %vm266_vm0, %v5941_v44  ;;  %v6119_v43 = vld [vmem:[%s5726_s27 + $0x90] sm:$0xff] }
  0x48   : > { %6919 = vst [vmem:[#allocation25_spill] sm:$0xff] %v6119_v43 }
  0x4a   : > { %4823 = vmatmul.mubr.msk.f32.gmra.mrb[26].mxu1 %vm266_vm0, %v5952_v45  ;;  %5049 = vmatmul.mubr.msk.f32.gmra.mrb[10].mxu0 %vm266_vm0, %v5955_v46  ;;  %v6116_v45 = vld [vmem:[%s5726_s27 + $0x15a] sm:$0xff] }
  0x4b   : > { %4825 = vmatprep.mubr.msk.f32.mxu1 %vm266_vm0, %v5958_v47  ;;  %5051 = vmatprep.mubr.msk.f32.mxu0 %vm266_vm0, %v5961_v48  ;;  %v6113_v47 = vld [vmem:[%s5726_s27 + $0x80] sm:$0xff] }
  0x4c   : > { %6918 = vst [vmem:[#allocation24_spill] sm:$0xff] %v6113_v47 }
  0x4e   : > { %4826 = vmatmul.mubr.msk.f32.gmra.mrb[28].mxu1 %vm266_vm0, %v5972_v49  ;;  %5052 = vmatmul.mubr.msk.f32.gmra.mrb[12].mxu0 %vm266_vm0, %v5975_v50  ;;  %v6102_v49 = vld [vmem:[%s5726_s27 + $0x152] sm:$0xff] }
  0x4f   : > { %4828 = vmatprep.mubr.msk.f32.mxu1 %vm266_vm0, %v5978_v51  ;;  %5054 = vmatprep.mubr.msk.f32.mxu0 %vm266_vm0, %v5981_v52  ;;  %v6099_v51 = vld [vmem:[%s5726_s27 + $0x78] sm:$0xff] }
  0x50   : > { %6917 = vst [vmem:[#allocation23_spill] sm:$0xff] %v6099_v51 }
  0x52   : > { %4829 = vmatmul.mubr.msk.f32.gmra.mrb[30].mxu1 %vm266_vm0, %v5992_v53  ;;  %5055 = vmatmul.mubr.msk.f32.gmra.mrb[14].mxu0 %vm266_vm0, %v5995_v54  ;;  %v6096_v53 = vld [vmem:[%s5726_s27 + $0x142] sm:$0xff] }
  0x53   : > { %4833 = vmatprep.mubr.msk.f32.mxu1 %vm266_vm0, %v199_v55  ;;  %5057 = vmatprep.mubr.msk.f32.mxu0 %vm266_vm0, %v5999_v56  ;;  %v6082_v55 = vld [vmem:[%s5726_s27 + $0x13a] sm:$0xff] }
  0x56   : > { %4834 = vmatmul.mubr.msk.f32.vlgmr.msra.gmra.mrb[0].mxu1 %vm266_vm0, %v200_v57  ;;  %5058 = vmatmul.mubr.msk.f32.gmra.mrb[16].mxu0 %vm266_vm0, %v6010_v58  ;;  %v6093_v57 = vld [vmem:[%s5726_s27 + $0x68] sm:$0xff] }
  0x57   : > { %4882 = vmatpush3.msra.mxu1 %v5745_v10  ;;  %4836 = vmatprep.mubr.msk.f32.mxu1 %vm266_vm0, %v6013_v59  ;;  %v6079_v10 = vld [vmem:[%s5726_s27 + $0x60] sm:$0xff]  ;;  %6916 = vst [vmem:[#allocation22_spill] sm:$0xff] %v6093_v57 }
  0x58   : > { %5060 = vmatprep.mubr.msk.f32.mxu0 %vm266_vm0, %v6016_v60  ;;  %4931 = vmatprep.subr.mxu1 %v6021_v61  ;;  %6915 = vst [vmem:[#allocation21_spill] sm:$0xff] %v6079_v10  ;;  %v6159_v59 = vld [vmem:[%s5726_s27 + $0xc0] sm:$0xff] }
  0x5a   : > { %4837 = vmatmul.mubr.msk.f32.gmra.mrb[2].mxu1 %vm266_vm0, %v6030_v62  ;;  %5061 = vmatmul.mubr.msk.f32.gmra.mrb[18].mxu0 %vm266_vm0, %v6033_v63  ;;  %v6153_v62 = vld [vmem:[%s5726_s27 + $0xb0] sm:$0xff] }
  0x5b   : > { %4839 = vmatprep.mubr.msk.f32.mxu1 %vm266_vm0, %v6038_v0  ;;  %5063 = vmatprep.mubr.msk.f32.mxu0 %vm266_vm0, %v6041_v2  ;;  %6924 = vst [vmem:[#allocation30_spill] sm:$0xff] %v6153_v62 }
  0x5e   : > { %4840 = vmatmul.mubr.msk.f32.gmra.mrb[4].mxu1 %vm266_vm0, %v6053_v3  ;;  %5064 = vmatmul.mubr.msk.f32.gmra.mrb[20].mxu0 %vm266_vm0, %v6056_v4 }
  0x5f   : > { %4842 = vmatprep.mubr.msk.f32.mxu1 %vm266_vm0, %v6059_v5  ;;  %5066 = vmatprep.mubr.msk.f32.mxu0 %vm266_vm0, %v6062_v6 }
  0x62   : > { %4843 = vmatmul.mubr.msk.f32.gmra.mrb[6].mxu1 %vm266_vm0, %v6073_v7  ;;  %5067 = vmatmul.mubr.msk.f32.gmra.mrb[22].mxu0 %vm266_vm0, %v6076_v9 }
  0x63   : > { %4845 = vmatprep.mubr.msk.f32.mxu1 %vm266_vm0, %v6079_v10  ;;  %5069 = vmatprep.mubr.msk.f32.mxu0 %vm266_vm0, %v6082_v55 }
  0x66   : > { %4846 = vmatmul.mubr.msk.f32.gmra.mrb[8].mxu1 %vm266_vm0, %v6093_v57  ;;  %5070 = vmatmul.mubr.msk.f32.gmra.mrb[24].mxu0 %vm266_vm0, %v6096_v53 }
  0x67   : > { %4848 = vmatprep.mubr.msk.f32.mxu1 %vm266_vm0, %v6099_v51  ;;  %5072 = vmatprep.mubr.msk.f32.mxu0 %vm266_vm0, %v6102_v49 }
  0x6a   : > { %4849 = vmatmul.mubr.msk.f32.gmra.mrb[10].mxu1 %vm266_vm0, %v6113_v47  ;;  %5073 = vmatmul.mubr.msk.f32.gmra.mrb[26].mxu0 %vm266_vm0, %v6116_v45 }
  0x6b   : > { %4851 = vmatprep.mubr.msk.f32.mxu1 %vm266_vm0, %v6119_v43  ;;  %5075 = vmatprep.mubr.msk.f32.mxu0 %vm266_vm0, %v6122_v41 }
  0x6e   : > { %4852 = vmatmul.mubr.msk.f32.gmra.mrb[12].mxu1 %vm266_vm0, %v6133_v39  ;;  %5076 = vmatmul.mubr.msk.f32.gmra.mrb[28].mxu0 %vm266_vm0, %v6136_v37  ;;  %v6178_v37 = vld [vmem:[%s6848_s1 + $0x40] sm:$0xff] }
  0x6f   : > { %4854 = vmatprep.mubr.msk.f32.mxu1 %vm266_vm0, %v6139_v35  ;;  %5078 = vmatprep.mubr.msk.f32.mxu0 %vm266_vm0, %v6142_v33  ;;  %v6170_v33 = vld [vmem:[%s5726_s27 + $0xc8] sm:$0xff] }
  0x70   : > { %6926 = vst [vmem:[#allocation32_spill] sm:$0xff] %v6170_v33 }
  0x72   : > { %4855 = vmatmul.mubr.msk.f32.gmra.mrb[14].mxu1 %vm266_vm0, %v6153_v62  ;;  %5079 = vmatmul.mubr.msk.f32.gmra.mrb[30].mxu0 %vm266_vm0, %v6156_v31  ;;  %v6188_v31 = vld [vmem:[%s5726_s27 + $0xe0] sm:$0xff] }
  0x73   : > { %4857 = vmatprep.mubr.msk.f32.mxu1 %vm266_vm0, %v6159_v59  ;;  %5083 = vmatprep.mubr.msk.f32.mxu0 %vm266_vm0, %v6038_v0  ;;  %v6193_v0 = vld [vmem:[%s5726_s27 + $0xf0] sm:$0xff] }
  0x76   : > { %4858 = vmatmul.mubr.msk.f32.gmra.mrb[16].mxu1 %vm266_vm0, %v6170_v33  ;;  %5084 = vmatmul.mubr.msk.f32.vlgmr.msra.gmra.mrb[0].mxu0 %vm266_vm0, %v6053_v3  ;;  %v909_v3 = vld [vmem:[%s5726_s27 + $0x2] sm:$0xff] }
  0x77   : > { %5132 = vmatpush3.msra.mxu0 %v5860_v28  ;;  %4860 = vmatprep.mubr.msk.f32.mxu1 %vm266_vm0, %v6173_v29  ;;  %v6205_v28 = vld [vmem:[%s5726_s27 + $0xf8] sm:$0xff] }
  0x78   : > { %5086 = vmatprep.mubr.msk.f32.mxu0 %vm266_vm0, %v6059_v5  ;;  %5181 = vmatprep.subr.mxu0 %v6178_v37  ;;  %v6208_v5 = vld [vmem:[%s5726_s27 + $0x108] sm:$0xff] }
  0x7a   : > { %4861 = vmatmul.mubr.msk.f32.gmra.mrb[18].mxu1 %vm266_vm0, %v6188_v31  ;;  %5087 = vmatmul.mubr.msk.f32.gmra.mrb[2].mxu0 %vm266_vm0, %v6073_v7  ;;  %v6219_v7 = vld [vmem:[%s5726_s27 + $0x110] sm:$0xff] }
  0x7b   : > { %4863 = vmatprep.mubr.msk.f32.mxu1 %vm266_vm0, %v6193_v0  ;;  %5089 = vmatprep.mubr.msk.f32.mxu0 %vm266_vm0, %v6079_v10  ;;  %v6222_v10 = vld [vmem:[%s5726_s27 + $0x120] sm:$0xff] }
  0x7e   : > { %4864 = vmatmul.mubr.msk.f32.gmra.mrb[20].mxu1 %vm266_vm0, %v6205_v28  ;;  %5090 = vmatmul.mubr.msk.f32.gmra.mrb[4].mxu0 %vm266_vm0, %v6093_v57  ;;  %v6233_v57 = vld [vmem:[%s5726_s27 + $0x128] sm:$0xff] }
  0x7f   : > { %4866 = vmatprep.mubr.msk.f32.mxu1 %vm266_vm0, %v6208_v5  ;;  %5092 = vmatprep.mubr.msk.f32.mxu0 %vm266_vm0, %v6099_v51  ;;  %v6236_v51 = vld [vmem:[%s5726_s27 + $0x138] sm:$0xff] }
  0x82   : > { %4867 = vmatmul.mubr.msk.f32.gmra.mrb[22].mxu1 %vm266_vm0, %v6219_v7  ;;  %5093 = vmatmul.mubr.msk.f32.gmra.mrb[6].mxu0 %vm266_vm0, %v6113_v47  ;;  %v6247_v47 = vld [vmem:[%s5726_s27 + $0x140] sm:$0xff] }
  0x83   : > { %4869 = vmatprep.mubr.msk.f32.mxu1 %vm266_vm0, %v6222_v10  ;;  %5095 = vmatprep.mubr.msk.f32.mxu0 %vm266_vm0, %v6119_v43  ;;  %v6250_v43 = vld [vmem:[%s5726_s27 + $0x150] sm:$0xff] }
  0x86   : > { %4870 = vmatmul.mubr.msk.f32.gmra.mrb[24].mxu1 %vm266_vm0, %v6233_v57  ;;  %5096 = vmatmul.mubr.msk.f32.gmra.mrb[8].mxu0 %vm266_vm0, %v6133_v39  ;;  %v6261_v39 = vld [vmem:[%s5726_s27 + $0x158] sm:$0xff] }
  0x87   : > { %4872 = vmatprep.mubr.msk.f32.mxu1 %vm266_vm0, %v6236_v51  ;;  %5098 = vmatprep.mubr.msk.f32.mxu0 %vm266_vm0, %v6139_v35  ;;  %v6264_v35 = vld [vmem:[%s5726_s27 + $0x168] sm:$0xff] }
  0x8a   : > { %4873 = vmatmul.mubr.msk.f32.gmra.mrb[26].mxu1 %vm266_vm0, %v6247_v47  ;;  %5099 = vmatmul.mubr.msk.f32.gmra.mrb[10].mxu0 %vm266_vm0, %v6153_v62  ;;  %v6275_v62 = vld [vmem:[%s5726_s27 + $0x170] sm:$0xff] }
  0x8b   : > { %4875 = vmatprep.mubr.msk.f32.mxu1 %vm266_vm0, %v6250_v43  ;;  %5101 = vmatprep.mubr.msk.f32.mxu0 %vm266_vm0, %v6159_v59 }
  0x8e   : > { %4876 = vmatmul.mubr.msk.f32.gmra.mrb[28].mxu1 %vm266_vm0, %v6261_v39  ;;  %5102 = vmatmul.mubr.msk.f32.gmra.mrb[12].mxu0 %vm266_vm0, %v6170_v33  ;;  %v910_v33 = vld [vmem:[%s5726_s27 + $0xa] sm:$0xff] }
  0x8f   : > { %4878 = vmatprep.mubr.msk.f32.mxu1 %vm266_vm0, %v6264_v35  ;;  %5104 = vmatprep.mubr.msk.f32.mxu0 %vm266_vm0, %v6173_v29 }
  0x92   : > { %4879 = vmatmul.mubr.msk.f32.gmra.mrb[30].mxu1 %vm266_vm0, %v6275_v62  ;;  %5105 = vmatmul.mubr.msk.f32.gmra.mrb[14].mxu0 %vm266_vm0, %v6188_v31 }
  0x93   : > { %4883 = vmatprep.mubr.msk.f32.mxu1 %vm266_vm0, %v909_v3  ;;  %5107 = vmatprep.mubr.msk.f32.mxu0 %vm266_vm0, %v6193_v0  ;;  %v6943_v3 = vld [vmem:[#allocation22_spill] sm:$0xff] }
  0x96   : > { %4884 = vmatmul.mubr.msk.f32.vlgmr.msra.gmra.mrb[0].mxu1 %vm266_vm0, %v910_v33  ;;  %5108 = vmatmul.mubr.msk.f32.gmra.mrb[16].mxu0 %vm266_vm0, %v6205_v28  ;;  %v4315_v33 = vld [vmem:[%s5726_s27 + $0x198] sm:$0xff] }
  0x97   : > { %4932 = vmatpush3.msra.mxu1 %v6021_v61  ;;  %4886 = vmatprep.mubr.msk.f32.mxu1 %vm266_vm0, %v5838_v24  ;;  %v6328_v24 = vld [vmem:[%s5726_s27 + $0x180] sm:$0xff] }
  0x98   : > { %5110 = vmatprep.mubr.msk.f32.mxu0 %vm266_vm0, %v6208_v5  ;;  %5231 = vmatprep.subr.mxu1 %v5710_v1  ;;  %v4316_v61 = vld [vmem:[%s5726_s27 + $0x1a0] sm:$0xff] }
  0x9a   : > { %4887 = vmatmul.mubr.msk.f32.gmra.mrb[2].mxu1 %vm266_vm0, %v5849_v25  ;;  %5111 = vmatmul.mubr.msk.f32.gmra.mrb[18].mxu0 %vm266_vm0, %v6219_v7  ;;  %v6339_v25 = vld [vmem:[%s5726_s27 + $0x188] sm:$0xff] }
  0x9b   : > { %4889 = vmatprep.mubr.msk.f32.mxu1 %vm266_vm0, %v5855_v27  ;;  %5113 = vmatprep.mubr.msk.f32.mxu0 %vm266_vm0, %v6222_v10 }
  0x9e   : > { %4890 = vmatmul.mubr.msk.f32.gmra.mrb[4].mxu1 %vm266_vm0, %v5872_v30  ;;  %5114 = vmatmul.mubr.msk.f32.gmra.mrb[20].mxu0 %vm266_vm0, %v6233_v57 }
  0x9f   : > { %4892 = vmatprep.mubr.msk.f32.mxu1 %vm266_vm0, %v5880_v32  ;;  %5116 = vmatprep.mubr.msk.f32.mxu0 %vm266_vm0, %v6236_v51 }
  0xa2   : > { %4893 = vmatmul.mubr.msk.f32.gmra.mrb[6].mxu1 %vm266_vm0, %v5895_v34  ;;  %5117 = vmatmul.mubr.msk.f32.gmra.mrb[22].mxu0 %vm266_vm0, %v6247_v47 }
  0xa3   : > { %4895 = vmatprep.mubr.msk.f32.mxu1 %vm266_vm0, %v5901_v36  ;;  %5119 = vmatprep.mubr.msk.f32.mxu0 %vm266_vm0, %v6250_v43 }
  0xa6   : > { %4896 = vmatmul.mubr.msk.f32.gmra.mrb[8].mxu1 %vm266_vm0, %v5915_v38  ;;  %5120 = vmatmul.mubr.msk.f32.gmra.mrb[24].mxu0 %vm266_vm0, %v6261_v39 }
  0xa7   : > { %4898 = vmatprep.mubr.msk.f32.mxu1 %vm266_vm0, %v5921_v40  ;;  %5122 = vmatprep.mubr.msk.f32.mxu0 %vm266_vm0, %v6264_v35 }
  0xaa   : > { %4899 = vmatmul.mubr.msk.f32.gmra.mrb[10].mxu1 %vm266_vm0, %v5935_v42  ;;  %5123 = vmatmul.mubr.msk.f32.gmra.mrb[26].mxu0 %vm266_vm0, %v6275_v62 }
  0xab   : > { %4901 = vmatprep.mubr.msk.f32.mxu1 %vm266_vm0, %v5941_v44  ;;  %5125 = vmatprep.mubr.msk.f32.mxu0 %vm266_vm0, %v6328_v24 }
  0xae   : > { %4902 = vmatmul.mubr.msk.f32.gmra.mrb[12].mxu1 %vm266_vm0, %v5955_v46  ;;  %5126 = vmatmul.mubr.msk.f32.gmra.mrb[28].mxu0 %vm266_vm0, %v6339_v25 }
  0xaf   : > { %4904 = vmatprep.mubr.msk.f32.mxu1 %vm266_vm0, %v5961_v48  ;;  %5128 = vmatprep.mubr.msk.f32.mxu0 %vm266_vm0, %v4315_v33  ;;  %v6944_v33 = vld [vmem:[#allocation10_spill] sm:$0xff] }
  0xb2   : > { %4905 = vmatmul.mubr.msk.f32.gmra.mrb[14].mxu1 %vm266_vm0, %v5975_v50  ;;  %5129 = vmatmul.mubr.msk.f32.gmra.mrb[30].mxu0 %vm266_vm0, %v4316_v61  ;;  %v6945_v61 = vld [vmem:[#allocation23_spill] sm:$0xff] }
  0xb3   : > { %4907 = vmatprep.mubr.msk.f32.mxu1 %vm266_vm0, %v5981_v52  ;;  %5133 = vmatprep.mubr.msk.f32.mxu0 %vm266_vm0, %v5735_v8  ;;  %v6927_v8 = vld [vmem:[#allocation27_spill] sm:$0xff] }
  0xb6   : > { %4908 = vmatmul.mubr.msk.f32.gmra.mrb[16].mxu1 %vm266_vm0, %v5995_v54  ;;  %5134 = vmatmul.mubr.msk.f32.vlgmr.msra.gmra.mrb[0].mxu0 %vm266_vm0, %v5748_v11  ;;  %v6928_v11 = vld [vmem:[#allocation2_spill] sm:$0xff] }
  0xb7   : > { %5182 = vmatpush3.msra.mxu0 %v6178_v37  ;;  %4910 = vmatprep.mubr.msk.f32.mxu1 %vm266_vm0, %v5999_v56  ;;  %v6942_v37 = vld [vmem:[#allocation9_spill] sm:$0xff] }
  0xb8   : > { %5136 = vmatprep.mubr.msk.f32.mxu0 %vm266_vm0, %v5754_v12  ;;  %v6929_v12 = vld [vmem:[#allocation15_spill] sm:$0xff] }
  0xba   : > { %4911 = vmatmul.mubr.msk.f32.gmra.mrb[18].mxu1 %vm266_vm0, %v6010_v58  ;;  %5137 = vmatmul.mubr.msk.f32.gmra.mrb[2].mxu0 %vm266_vm0, %v5765_v13  ;;  %v6930_v13 = vld [vmem:[#allocation3_spill] sm:$0xff] }
  0xbb   : > { %4913 = vmatprep.mubr.msk.f32.mxu1 %vm266_vm0, %v6016_v60  ;;  %5139 = vmatprep.mubr.msk.f32.mxu0 %vm266_vm0, %v5768_v14  ;;  %v6931_v14 = vld [vmem:[#allocation16_spill] sm:$0xff] }
  0xbe   : > { %4914 = vmatmul.mubr.msk.f32.gmra.mrb[20].mxu1 %vm266_vm0, %v6033_v63  ;;  %5140 = vmatmul.mubr.msk.f32.gmra.mrb[4].mxu0 %vm266_vm0, %v5779_v15  ;;  %v6932_v15 = vld [vmem:[#allocation4_spill] sm:$0xff] }
  0xbf   : > { %4916 = vmatprep.mubr.msk.f32.mxu1 %vm266_vm0, %v6041_v2  ;;  %5142 = vmatprep.mubr.msk.f32.mxu0 %vm266_vm0, %v5782_v16  ;;  %v6933_v16 = vld [vmem:[#allocation17_spill] sm:$0xff] }
  0xc2   : > { %4917 = vmatmul.mubr.msk.f32.gmra.mrb[22].mxu1 %vm266_vm0, %v6056_v4  ;;  %5143 = vmatmul.mubr.msk.f32.gmra.mrb[6].mxu0 %vm266_vm0, %v5793_v17  ;;  %v6934_v17 = vld [vmem:[#allocation5_spill] sm:$0xff] }
  0xc3   : > { %4919 = vmatprep.mubr.msk.f32.mxu1 %vm266_vm0, %v6062_v6  ;;  %5145 = vmatprep.mubr.msk.f32.mxu0 %vm266_vm0, %v5796_v18  ;;  %v6935_v18 = vld [vmem:[#allocation18_spill] sm:$0xff] }
  0xc6   : > { %4920 = vmatmul.mubr.msk.f32.gmra.mrb[24].mxu1 %vm266_vm0, %v6076_v9  ;;  %5146 = vmatmul.mubr.msk.f32.gmra.mrb[8].mxu0 %vm266_vm0, %v5807_v19  ;;  %v6936_v19 = vld [vmem:[#allocation6_spill] sm:$0xff] }
  0xc7   : > { %4922 = vmatprep.mubr.msk.f32.mxu1 %vm266_vm0, %v6082_v55  ;;  %5148 = vmatprep.mubr.msk.f32.mxu0 %vm266_vm0, %v5810_v20  ;;  %v6937_v20 = vld [vmem:[#allocation19_spill] sm:$0xff] }
  0xca   : > { %4923 = vmatmul.mubr.msk.f32.gmra.mrb[26].mxu1 %vm266_vm0, %v6096_v53  ;;  %5149 = vmatmul.mubr.msk.f32.gmra.mrb[10].mxu0 %vm266_vm0, %v5821_v21  ;;  %v6938_v21 = vld [vmem:[#allocation7_spill] sm:$0xff] }
  0xcb   : > { %4925 = vmatprep.mubr.msk.f32.mxu1 %vm266_vm0, %v6102_v49  ;;  %5151 = vmatprep.mubr.msk.f32.mxu0 %vm266_vm0, %v5824_v22  ;;  %v6940_v22 = vld [vmem:[#allocation8_spill] sm:$0xff] }
  0xce   : > { %4926 = vmatmul.mubr.msk.f32.gmra.mrb[28].mxu1 %vm266_vm0, %v6116_v45  ;;  %5152 = vmatmul.mubr.msk.f32.gmra.mrb[12].mxu0 %vm266_vm0, %v5835_v23  ;;  %v6941_v23 = vld [vmem:[#allocation21_spill] sm:$0xff] }
  0xcf   : > { %4928 = vmatprep.mubr.msk.f32.mxu1 %vm266_vm0, %v6122_v41  ;;  %5154 = vmatprep.mubr.msk.f32.mxu0 %vm266_vm0, %v5852_v26 }
  0xd2   : > { %4929 = vmatmul.mubr.msk.f32.gmra.mrb[30].mxu1 %vm266_vm0, %v6927_v8  ;;  %5155 = vmatmul.mubr.msk.f32.gmra.mrb[14].mxu0 %vm266_vm0, %v6928_v11  ;;  %v6954_v8 = vld [vmem:[#allocation30_spill] sm:$0xff] }
  0xd3   : > { %4933 = vmatprep.mubr.msk.f32.mxu1 %vm266_vm0, %v6929_v12  ;;  %5157 = vmatprep.mubr.msk.f32.mxu0 %vm266_vm0, %v6930_v13  ;;  %v6946_v12 = vld [vmem:[#allocation11_spill] sm:$0xff] }
  0xd6   : > { %4934 = vmatmul.mubr.msk.f32.vlgmr.msra.gmra.mrb[0].mxu1 %vm266_vm0, %v6931_v14  ;;  %5158 = vmatmul.mubr.msk.f32.gmra.mrb[16].mxu0 %vm266_vm0, %v6932_v15  ;;  %v6947_v14 = vld [vmem:[#allocation24_spill] sm:$0xff] }
  0xd7   : > { %5232 = vmatpush3.msra.mxu1 %v5710_v1  ;;  %4936 = vmatprep.mubr.msk.f32.mxu1 %vm266_vm0, %v6933_v16  ;;  %v6939_v1 = vld [vmem:[#allocation20_spill] sm:$0xff] }
  0xd8   : > { %5160 = vmatprep.mubr.msk.f32.mxu0 %vm266_vm0, %v6934_v17  ;;  %v6948_v16 = vld [vmem:[#allocation12_spill] sm:$0xff] }
  0xda   : > { %4937 = vmatmul.mubr.msk.f32.gmra.mrb[2].mxu1 %vm266_vm0, %v6935_v18  ;;  %5161 = vmatmul.mubr.msk.f32.gmra.mrb[18].mxu0 %vm266_vm0, %v6936_v19  ;;  %v6949_v18 = vld [vmem:[#allocation25_spill] sm:$0xff] }
  0xdb   : > { %4939 = vmatprep.mubr.msk.f32.mxu1 %vm266_vm0, %v6937_v20  ;;  %5163 = vmatprep.mubr.msk.f32.mxu0 %vm266_vm0, %v6938_v21  ;;  %v6950_v20 = vld [vmem:[#allocation13_spill] sm:$0xff] }
  0xde   : > { %4940 = vmatmul.mubr.msk.f32.gmra.mrb[4].mxu1 %vm266_vm0, %v6939_v1  ;;  %5164 = vmatmul.mubr.msk.f32.gmra.mrb[20].mxu0 %vm266_vm0, %v6940_v22  ;;  %v6464_v1 = vld [vmem:[%s5726_s27 + $0x181] sm:$0xff] }
  0xdf   : > { %4942 = vmatprep.mubr.msk.f32.mxu1 %vm266_vm0, %v6941_v23  ;;  %5166 = vmatprep.mubr.msk.f32.mxu0 %vm266_vm0, %v6942_v37  ;;  %v6951_v23 = vld [vmem:[#allocation26_spill] sm:$0xff] }
  0xe2   : > { %4943 = vmatmul.mubr.msk.f32.gmra.mrb[6].mxu1 %vm266_vm0, %v6943_v3  ;;  %5167 = vmatmul.mubr.msk.f32.gmra.mrb[22].mxu0 %vm266_vm0, %v6944_v33  ;;  %v6952_v3 = vld [vmem:[#allocation14_spill] sm:$0xff] }
  0xe3   : > { %4945 = vmatprep.mubr.msk.f32.mxu1 %vm266_vm0, %v6945_v61  ;;  %5169 = vmatprep.mubr.msk.f32.mxu0 %vm266_vm0, %v6946_v12  ;;  %v6953_v61 = vld [vmem:[#allocation28_spill] sm:$0xff] }
  0xe6   : > { %4946 = vmatmul.mubr.msk.f32.gmra.mrb[8].mxu1 %vm266_vm0, %v6947_v14  ;;  %5170 = vmatmul.mubr.msk.f32.gmra.mrb[24].mxu0 %vm266_vm0, %v6948_v16  ;;  %v6475_v14 = vld [vmem:[%s5726_s27 + $0x189] sm:$0xff] }
  0xe7   : > { %4948 = vmatprep.mubr.msk.f32.mxu1 %vm266_vm0, %v6949_v18  ;;  %5172 = vmatprep.mubr.msk.f32.mxu0 %vm266_vm0, %v6950_v20  ;;  %v4380_v18 = vld [vmem:[%s5726_s27 + $0x199] sm:$0xff] }
  0xea   : > { %4949 = vmatmul.mubr.msk.f32.gmra.mrb[10].mxu1 %vm266_vm0, %v6951_v23  ;;  %5173 = vmatmul.mubr.msk.f32.gmra.mrb[26].mxu0 %vm266_vm0, %v6952_v3  ;;  %v4381_v23 = vld [vmem:[%s5726_s27 + $0x1a1] sm:$0xff]  ;;  %v6955_v3 = vld [vmem:[#allocation32_spill] sm:$0xff] }
  0xeb   : > { %4951 = vmatprep.mubr.msk.f32.mxu1 %vm266_vm0, %v6953_v61  ;;  %5175 = vmatprep.mubr.msk.f32.mxu0 %vm266_vm0, %v6464_v1 }
  0xee   : > { %4952 = vmatmul.mubr.msk.f32.gmra.mrb[12].mxu1 %vm266_vm0, %v6954_v8  ;;  %5176 = vmatmul.mubr.msk.f32.gmra.mrb[28].mxu0 %vm266_vm0, %v6475_v14 }
  0xef   : > { %4954 = vmatprep.mubr.msk.f32.mxu1 %vm266_vm0, %v6159_v59  ;;  %5178 = vmatprep.mubr.msk.f32.mxu0 %vm266_vm0, %v4380_v18 }
  0xf2   : > { %4955 = vmatmul.mubr.msk.f32.gmra.mrb[14].mxu1 %vm266_vm0, %v6955_v3  ;;  %5179 = vmatmul.mubr.msk.f32.gmra.mrb[30].mxu0 %vm266_vm0, %v4381_v23 }
  0xf3   : > { %4957 = vmatprep.mubr.msk.f32.mxu1 %vm266_vm0, %v6173_v29  ;;  %5183 = vmatprep.mubr.msk.f32.mxu0 %vm266_vm0, %v5855_v27  ;;  %v6957_v27 = vld [vmem:[#allocation29_spill] sm:$0xff] }
  0xf4   : > { %v4445_v29 = vld [vmem:[%s5726_s27 + $0x19a] sm:$0xff] }
  0xf6   : > { %4958 = vmatmul.mubr.msk.f32.gmra.mrb[16].mxu1 %vm266_vm0, %v6188_v31  ;;  %5184 = vmatmul.mubr.msk.f32.vlgmr.msra.gmra.mrb[0].mxu0 %vm266_vm0, %v5872_v30  ;;  %v6958_v30 = vld [vmem:[#allocation14_spill] sm:$0xff]  ;;  %v6959_v31 = vld [vmem:[#allocation31_spill] sm:$0xff] }
  0xf7   : > { %4960 = vmatprep.mubr.msk.f32.mxu1 %vm266_vm0, %v6193_v0  ;;  %5186 = vmatprep.mubr.msk.f32.mxu0 %vm266_vm0, %v5880_v32  ;;  %v4446_v32 = vld [vmem:[%s5726_s27 + $0x1a2] sm:$0xff] }
  0xfa   : > { %4961 = vmatmul.mubr.msk.f32.gmra.mrb[18].mxu1 %vm266_vm0, %v6205_v28  ;;  %5187 = vmatmul.mubr.msk.f32.gmra.mrb[2].mxu0 %vm266_vm0, %v5895_v34 }
  0xfb   : > { %4963 = vmatprep.mubr.msk.f32.mxu1 %vm266_vm0, %v6208_v5  ;;  %5189 = vmatprep.mubr.msk.f32.mxu0 %vm266_vm0, %v5901_v36 }
  0xfe   : > { %4964 = vmatmul.mubr.msk.f32.gmra.mrb[20].mxu1 %vm266_vm0, %v6219_v7  ;;  %5190 = vmatmul.mubr.msk.f32.gmra.mrb[4].mxu0 %vm266_vm0, %v5915_v38 }
  0xff   : > { %4966 = vmatprep.mubr.msk.f32.mxu1 %vm266_vm0, %v6222_v10  ;;  %5192 = vmatprep.mubr.msk.f32.mxu0 %vm266_vm0, %v5921_v40 }
 0x102   : > { %4967 = vmatmul.mubr.msk.f32.gmra.mrb[22].mxu1 %vm266_vm0, %v6233_v57  ;;  %5193 = vmatmul.mubr.msk.f32.gmra.mrb[6].mxu0 %vm266_vm0, %v5935_v42 }
 0x103   : > { %4969 = vmatprep.mubr.msk.f32.mxu1 %vm266_vm0, %v6236_v51  ;;  %5195 = vmatprep.mubr.msk.f32.mxu0 %vm266_vm0, %v5941_v44 }
 0x106   : > { %4970 = vmatmul.mubr.msk.f32.gmra.mrb[24].mxu1 %vm266_vm0, %v6247_v47  ;;  %5196 = vmatmul.mubr.msk.f32.gmra.mrb[8].mxu0 %vm266_vm0, %v5955_v46 }
 0x107   : > { %4972 = vmatprep.mubr.msk.f32.mxu1 %vm266_vm0, %v6250_v43  ;;  %5198 = vmatprep.mubr.msk.f32.mxu0 %vm266_vm0, %v5961_v48 }
 0x10a   : > { %4973 = vmatmul.mubr.msk.f32.gmra.mrb[26].mxu1 %vm266_vm0, %v6261_v39  ;;  %5199 = vmatmul.mubr.msk.f32.gmra.mrb[10].mxu0 %vm266_vm0, %v5975_v50 }
 0x10b   : > { %4975 = vmatprep.mubr.msk.f32.mxu1 %vm266_vm0, %v6264_v35  ;;  %5201 = vmatprep.mubr.msk.f32.mxu0 %vm266_vm0, %v5981_v52  ;;  %v6632_v52 = vld [vmem:[%s6849_s2] ss:$0 sm:$0xff] }
 0x10e   : > { %4976 = vmatmul.mubr.msk.f32.gmra.mrb[28].mxu1 %vm266_vm0, %v6275_v62  ;;  %5202 = vmatmul.mubr.msk.f32.gmra.mrb[12].mxu0 %vm266_vm0, %v5995_v54 }
 0x10f   : > { %4978 = vmatprep.mubr.msk.f32.mxu1 %vm266_vm0, %v6328_v24  ;;  %5204 = vmatprep.mubr.msk.f32.mxu0 %vm266_vm0, %v5999_v56 }
 0x112   : > { %4979 = vmatmul.mubr.msk.f32.gmra.mrb[30].mxu1 %vm266_vm0, %v6339_v25  ;;  %5205 = vmatmul.mubr.msk.f32.gmra.mrb[14].mxu0 %vm266_vm0, %v6010_v58 }
 0x113   : > { %5007 = vmatprep.mubr.msk.f32.mxu1 %vm266_vm0, %v5852_v26  ;;  %5207 = vmatprep.mubr.msk.f32.mxu0 %vm266_vm0, %v6016_v60  ;;  %v6956_v26 = vld [vmem:[#allocation27_spill] sm:$0xff] }
 0x116   : > { %5008 = vmatmul.mubr.msk.f32.vlgmr.msra.gmra.mrb[16].mxu1 %vm266_vm0, %v6928_v11  ;;  %5208 = vmatmul.mubr.msk.f32.gmra.mrb[16].mxu0 %vm266_vm0, %v6033_v63 }
 0x117   : > { %5010 = vmatprep.mubr.msk.f32.mxu1 %vm266_vm0, %v6930_v13  ;;  %5210 = vmatprep.mubr.msk.f32.mxu0 %vm266_vm0, %v6041_v2 }
 0x11a   : > { %5011 = vmatmul.mubr.msk.f32.gmra.mrb[18].mxu1 %vm266_vm0, %v6932_v15  ;;  %5211 = vmatmul.mubr.msk.f32.gmra.mrb[18].mxu0 %vm266_vm0, %v6056_v4 }
 0x11b   : > { %5013 = vmatprep.mubr.msk.f32.mxu1 %vm266_vm0, %v6934_v17  ;;  %5213 = vmatprep.mubr.msk.f32.mxu0 %vm266_vm0, %v6062_v6 }
 0x11e   : > { %5014 = vmatmul.mubr.msk.f32.gmra.mrb[20].mxu1 %vm266_vm0, %v6936_v19  ;;  %5214 = vmatmul.mubr.msk.f32.gmra.mrb[20].mxu0 %vm266_vm0, %v6076_v9 }
 0x11f   : > { %5016 = vmatprep.mubr.msk.f32.mxu1 %vm266_vm0, %v6938_v21  ;;  %5216 = vmatprep.mubr.msk.f32.mxu0 %vm266_vm0, %v6082_v55 }
 0x122   : > { %5017 = vmatmul.mubr.msk.f32.gmra.mrb[22].mxu1 %vm266_vm0, %v6940_v22  ;;  %5217 = vmatmul.mubr.msk.f32.gmra.mrb[22].mxu0 %vm266_vm0, %v6096_v53 }
 0x123   : > { %5019 = vmatprep.mubr.msk.f32.mxu1 %vm266_vm0, %v6942_v37  ;;  %5219 = vmatprep.mubr.msk.f32.mxu0 %vm266_vm0, %v6102_v49 }
 0x126   : > { %5020 = vmatmul.mubr.msk.f32.gmra.mrb[24].mxu1 %vm266_vm0, %v6944_v33  ;;  %5220 = vmatmul.mubr.msk.f32.gmra.mrb[24].mxu0 %vm266_vm0, %v6116_v45 }
 0x127   : > { %5022 = vmatprep.mubr.msk.f32.mxu1 %vm266_vm0, %v6946_v12  ;;  %5222 = vmatprep.mubr.msk.f32.mxu0 %vm266_vm0, %v6122_v41 }
 0x12a   : > { %5023 = vmatmul.mubr.msk.f32.gmra.mrb[26].mxu1 %vm266_vm0, %v6948_v16  ;;  %5223 = vmatmul.mubr.msk.f32.gmra.mrb[26].mxu0 %vm266_vm0, %v6956_v26 }
 0x12b   : > { %5025 = vmatprep.mubr.msk.f32.mxu1 %vm266_vm0, %v6950_v20  ;;  %5225 = vmatprep.mubr.msk.f32.mxu0 %vm266_vm0, %v6957_v27 }
 0x12e   : > { %5026 = vmatmul.mubr.msk.f32.gmra.mrb[28].mxu1 %vm266_vm0, %v6958_v30  ;;  %5226 = vmatmul.mubr.msk.f32.gmra.mrb[28].mxu0 %vm266_vm0, %v6959_v31 }
 0x12f   : > { %5028 = vmatprep.mubr.msk.f32.mxu1 %vm266_vm0, %v6464_v1  ;;  %5228 = vmatprep.mubr.msk.f32.mxu0 %vm266_vm0, %v4445_v29 }
 0x132   : > { %5029 = vmatmul.mubr.msk.f32.gmra.mrb[30].mxu1 %vm266_vm0, %v6475_v14  ;;  %5229 = vmatmul.mubr.msk.f32.gmra.mrb[30].mxu0 %vm266_vm0, %v4446_v32 }
 0x1a9   : > { %v4935_v34 = vpop.f32.mrb[0].mxu1 }
 0x1aa   : > { %v1495_v35 = vpop.f32.mrb[1].mxu1 }
 0x1ad   : > { %v4938_v36 = vpop.f32.mrb[2].mxu1 }
 0x1ae   : > { %v1505_v38 = vpop.f32.mrb[3].mxu1 }
 0x1b1   : > { %v4941_v39 = vpop.f32.mrb[4].mxu1 }
 0x1b2   : > { %v1515_v40 = vpop.f32.mrb[5].mxu1 }
 0x1b5   : > { %v4944_v41 = vpop.f32.mrb[6].mxu1 }
 0x1b6   : > { %v1525_v42 = vpop.f32.mrb[7].mxu1 }
 0x1b9   : > { %v4947_v43 = vpop.f32.mrb[8].mxu1 }
 0x1ba   : > { %v1535_v44 = vpop.f32.mrb[9].mxu1 }
 0x1bd   : > { %v6617_v45 = vpop.f32.mrb[10].mxu1 }
 0x1be   : > { %v6619_v46 = vpop.f32.mrb[11].mxu1 }
 0x1c1   : > { %v6621_v47 = vpop.f32.mrb[12].mxu1 }
 0x1c2   : > { %v6623_v48 = vpop.f32.mrb[13].mxu1 }
 0x1c5   : > { %v6625_v49 = vpop.f32.mrb[14].mxu1 }
 0x1c6   : > { %v6627_v50 = vpop.f32.mrb[15].mxu1 }
 0x1c9   : > { %v5185_v51 = vpop.f32.mrb[0].mxu0 }
 0x1ca   : > { %v5233_v53 = vadd.f32 %v5185_v51, %v4935_v34  ;;  %v3433_v54 = vpop.f32.mrb[1].mxu0 }
 0x1cb   : > { %v5234_v56 = vadd.f32 %v3433_v54, %v1495_v35 }
 0x1cc   : > { %v6635_v58 = vadd.f32 %v5233_v53, %v6632_v52 }
 0x1cd   : > { %v6638_v59 = vadd.f32 %v5234_v56, %v6632_v52  ;;  %v5188_v60 = vpop.f32.mrb[2].mxu0 }
 0x1ce   : > { %v3664_v62 = vsub.f32 0.0, %v6635_v58  ;;  %v5235_v63 = vadd.f32 %v5188_v60, %v4938_v36  ;;  %v3443_v0 = vpop.f32.mrb[3].mxu0 }
 0x1cf   : > { %v3663_v2 = vsub.f32 0.0, %v6638_v59  ;;  %v5236_v4 = vadd.f32 %v3443_v0, %v1505_v38 }
 0x1d0   : > { %v3697_v5 = vmul.f32 1.442695, %v3664_v62  ;;  %v6643_v6 = vadd.f32 %v5235_v63, %v6632_v52 }
 0x1d1   : > { %v3695_v7 = vmul.f32 1.442695, %v3663_v2  ;;  %v6646_v9 = vadd.f32 %v5236_v4, %v6632_v52  ;;  %v5191_v10 = vpop.f32.mrb[4].mxu0 }
 0x1d2   : > { %5514 = vpow2.f32 %v3697_v5  ;;  %v3666_v55 = vsub.f32 0.0, %v6643_v6  ;;  %v5237_v57 = vadd.f32 %v5191_v10, %v4941_v39  ;;  %v3453_v28 = vpop.f32.mrb[5].mxu0 }
 0x1d3   : > { %5516 = vpow2.f32 %v3695_v7  ;;  %v3665_v24 = vsub.f32 0.0, %v6646_v9  ;;  %v5238_v25 = vadd.f32 %v3453_v28, %v1515_v40 }
 0x1d4   : > { %v3701_v8 = vmul.f32 1.442695, %v3666_v55  ;;  %v6651_v11 = vadd.f32 %v5237_v57, %v6632_v52 }
 0x1d5   : > { %v3699_v13 = vmul.f32 1.442695, %v3665_v24  ;;  %v6654_v15 = vadd.f32 %v5238_v25, %v6632_v52  ;;  %v5194_v17 = vpop.f32.mrb[6].mxu0 }
 0x1d6   : > { %5518 = vpow2.f32 %v3701_v8  ;;  %v3668_v19 = vsub.f32 0.0, %v6651_v11  ;;  %v5239_v21 = vadd.f32 %v5194_v17, %v4944_v41  ;;  %v3463_v22 = vpop.f32.mrb[7].mxu0 }
 0x1d7   : > { %5520 = vpow2.f32 %v3699_v13  ;;  %v3667_v37 = vsub.f32 0.0, %v6654_v15  ;;  %v5240_v33 = vadd.f32 %v3463_v22, %v1525_v42 }
 0x1d8   : > { %v3705_v12 = vmul.f32 1.442695, %v3668_v19  ;;  %v6659_v16 = vadd.f32 %v5239_v21, %v6632_v52 }
 0x1d9   : > { %v3703_v20 = vmul.f32 1.442695, %v3667_v37  ;;  %v6662_v1 = vadd.f32 %v5240_v33, %v6632_v52  ;;  %v5197_v3 = vpop.f32.mrb[8].mxu0 }
 0x1da   : > { %5522 = vpow2.f32 %v3705_v12  ;;  %v3670_v61 = vsub.f32 0.0, %v6659_v16  ;;  %v5241_v14 = vadd.f32 %v5197_v3, %v4947_v43  ;;  %v3473_v18 = vpop.f32.mrb[9].mxu0 }
 0x1db   : > { %5524 = vpow2.f32 %v3703_v20  ;;  %v3669_v23 = vsub.f32 0.0, %v6662_v1  ;;  %v5242_v26 = vadd.f32 %v3473_v18, %v1535_v44 }
 0x1dc   : > { %v5515_v27 = vpop.eup %5514  ;;  %v3709_v29 = vmul.f32 1.442695, %v3670_v61  ;;  %v6667_v30 = vadd.f32 %v5241_v14, %v6632_v52 }
 0x1dd   : > { %v5517_v31 = vpop.eup %5516  ;;  %v3760_v32 = vadd.f32 1.0, %v5515_v27  ;;  %v3707_v34 = vmul.f32 1.442695, %v3669_v23  ;;  %v6670_v35 = vadd.f32 %v5242_v26, %v6632_v52  ;;  %v5200_v36 = vpop.f32.mrb[10].mxu0 }
 0x1de   : > { %v3759_v38 = vadd.f32 1.0, %v5517_v31  ;;  %5526 = vpow2.f32 %v3709_v29  ;;  %v3672_v39 = vsub.f32 0.0, %v6667_v30  ;;  %v5243_v40 = vadd.f32 %v5200_v36, %v6617_v45  ;;  %v3483_v41 = vpop.f32.mrb[11].mxu0 }
 0x1df   : > { %5528 = vrcp.f32 %v3760_v32  ;;  %v3671_v42 = vsub.f32 0.0, %v6670_v35  ;;  %v5244_v43 = vadd.f32 %v3483_v41, %v6619_v46 }
 0x1e0   : > { %v5519_v44 = vpop.eup %5518  ;;  %5530 = vrcp.f32 %v3759_v38  ;;  %v3713_v51 = vmul.f32 1.442695, %v3672_v39  ;;  %v6677_v53 = vadd.f32 %v5243_v40, %v6632_v52 }
 0x1e1   : > { %v5521_v54 = vpop.eup %5520  ;;  %v3762_v56 = vadd.f32 1.0, %v5519_v44  ;;  %5532 = vpow2.f32 %v3707_v34  ;;  %v3711_v60 = vmul.f32 1.442695, %v3671_v42  ;;  %v6680_v62 = vadd.f32 %v5244_v43, %v6632_v52  ;;  %v5203_v45 = vpop.f32.mrb[12].mxu0 }
 0x1e2   : > { %v3761_v63 = vadd.f32 1.0, %v5521_v54  ;;  %5534 = vpow2.f32 %v3713_v51  ;;  %v3674_v0 = vsub.f32 0.0, %v6677_v53  ;;  %v5245_v46 = vadd.f32 %v5203_v45, %v6621_v47  ;;  %v3493_v2 = vpop.f32.mrb[13].mxu0 }
 0x1e3   : > { %5536 = vrcp.f32 %v3762_v56  ;;  %v3673_v4 = vsub.f32 0.0, %v6680_v62  ;;  %v5246_v5 = vadd.f32 %v3493_v2, %v6623_v48 }
 0x1e4   : > { %v5523_v7 = vpop.eup %5522  ;;  %5538 = vrcp.f32 %v3761_v63  ;;  %v3717_v10 = vmul.f32 1.442695, %v3674_v0  ;;  %v6687_v55 = vadd.f32 %v5245_v46, %v6632_v52 }
 0x1e5   : > { %v5525_v57 = vpop.eup %5524  ;;  %v3764_v28 = vadd.f32 1.0, %v5523_v7  ;;  %5540 = vpow2.f32 %v3711_v60  ;;  %v3715_v24 = vmul.f32 1.442695, %v3673_v4  ;;  %v6690_v25 = vadd.f32 %v5246_v5, %v6632_v52  ;;  %v5206_v47 = vpop.f32.mrb[14].mxu0 }
 0x1e6   : > { %v3763_v8 = vadd.f32 1.0, %v5525_v57  ;;  %5542 = vpow2.f32 %v3717_v10  ;;  %v3676_v13 = vsub.f32 0.0, %v6687_v55  ;;  %v5247_v48 = vadd.f32 %v5206_v47, %v6625_v49  ;;  %v3503_v17 = vpop.f32.mrb[15].mxu0 }
 0x1e7   : > { %5544 = vrcp.f32 %v3764_v28  ;;  %v3675_v19 = vsub.f32 0.0, %v6690_v25  ;;  %v5248_v21 = vadd.f32 %v3503_v17, %v6627_v50 }
 0x1e8   : > { %v5527_v22 = vpop.eup %5526  ;;  %5546 = vrcp.f32 %v3763_v8  ;;  %v3721_v37 = vmul.f32 1.442695, %v3676_v13  ;;  %v6698_v33 = vadd.f32 %v5247_v48, %v6632_v52 }
 0x1e9   : > { %v5529_v12 = vpop.eup %5528  ;;  %v3766_v20 = vadd.f32 1.0, %v5527_v22  ;;  %5548 = vpow2.f32 %v3715_v24  ;;  %v3719_v49 = vmul.f32 1.442695, %v3675_v19  ;;  %v6706_v3 = vadd.f32 %v5248_v21, %v6632_v52  ;;  %v5009_v50 = vpop.f32.mrb[16].mxu1 }
 0x1ea   : > { %v5209_v61 = vpop.f32.mrb[16].mxu0  ;;  %v5531_v14 = vpop.eup %5530  ;;  %v3824_v18 = vmul.f32 %v5529_v12, %v6635_v58  ;;  %5550 = vpow2.f32 %v3721_v37  ;;  %v3678_v23 = vsub.f32 0.0, %v6698_v33 }
 0x1eb   : > { %v5249_v26 = vadd.f32 %v5209_v61, %v5009_v50  ;;  %v1962_v27 = vpop.f32.mrb[17].mxu1  ;;  %v3513_v29 = vpop.f32.mrb[17].mxu0  ;;  %v3823_v32 = vmul.f32 %v5531_v14, %v6638_v59  ;;  %5552 = vrcp.f32 %v3766_v20  ;;  %v3677_v34 = vsub.f32 0.0, %v6706_v3 }
 0x1ec   : > { %v5533_v31 = vpop.eup %5532  ;;  %v5250_v36 = vadd.f32 %v3513_v29, %v1962_v27  ;;  %3856 = vst [vmem:[%s6703_s19 + $0x8] sm:$0xff] %v3824_v18  ;;  %5554 = vpow2.f32 %v3719_v49  ;;  %v3725_v40 = vmul.f32 1.442695, %v3678_v23 }
 0x1ed   : > { %v5535_v38 = vpop.eup %5534  ;;  %v3765_v39 = vadd.f32 1.0, %v5533_v31  ;;  %v6714_v58 = vadd.f32 %v5249_v26, %v6632_v52  ;;  %3855 = vst [vmem:[%s6703_s19] sm:$0xff] %v3823_v32  ;;  %v3723_v43 = vmul.f32 1.442695, %v3677_v34  ;;  %v5012_v59 = vpop.f32.mrb[18].mxu1 }
 0x1ee   : > { %v5537_v41 = vpop.eup %5536  ;;  %v3768_v42 = vadd.f32 1.0, %v5535_v38  ;;  %v6718_v44 = vadd.f32 %v5250_v36, %v6632_v52  ;;  %v5212_v51 = vpop.f32.mrb[18].mxu0 }
 0x1ef   : > { %v5539_v54 = vpop.eup %5538  ;;  %v3826_v56 = vmul.f32 %v5537_v41, %v6643_v6  ;;  %5556 = vrcp.f32 %v3765_v39  ;;  %v3680_v60 = vsub.f32 0.0, %v6714_v58  ;;  %v5251_v45 = vadd.f32 %v5212_v51, %v5012_v59  ;;  %v1972_v63 = vpop.f32.mrb[19].mxu1 }
 0x1f0   : > { %v3523_v0 = vpop.f32.mrb[19].mxu0  ;;  %v5541_v46 = vpop.eup %5540  ;;  %v3825_v2 = vmul.f32 %v5539_v54, %v6646_v9  ;;  %5558 = vrcp.f32 %v3768_v42  ;;  %v3679_v4 = vsub.f32 0.0, %v6718_v44 }
 0x1f1   : > { %v5252_v5 = vadd.f32 %v3523_v0, %v1972_v63  ;;  %v5543_v7 = vpop.eup %5542  ;;  %3858 = vst [vmem:[%s6703_s19 + $0x18] sm:$0xff] %v3826_v56  ;;  %v3767_v10 = vadd.f32 1.0, %v5541_v46  ;;  %5560 = vpow2.f32 %v3725_v40  ;;  %v3729_v57 = vmul.f32 1.442695, %v3680_v60  ;;  %v5015_v9 = vpop.f32.mrb[20].mxu1 }
 0x1f2   : > { %v6726_v6 = vadd.f32 %v5251_v45, %v6632_v52  ;;  %v5545_v28 = vpop.eup %5544  ;;  %3857 = vst [vmem:[%s6703_s19 + $0x10] sm:$0xff] %v3825_v2  ;;  %v3770_v24 = vadd.f32 1.0, %v5543_v7  ;;  %5562 = vpow2.f32 %v3723_v43  ;;  %v3727_v47 = vmul.f32 1.442695, %v3679_v4  ;;  %v5215_v13 = vpop.f32.mrb[20].mxu0 }
 0x1f3   : > { %v6730_v8 = vadd.f32 %v5252_v5, %v6632_v52  ;;  %v5547_v48 = vpop.eup %5546  ;;  %v3828_v17 = vmul.f32 %v5545_v28, %v6651_v11  ;;  %5564 = vrcp.f32 %v3767_v10  ;;  %v5253_v21 = vadd.f32 %v5215_v13, %v5015_v9  ;;  %v1982_v22 = vpop.f32.mrb[21].mxu1 }
 0x1f4   : > { %v3682_v19 = vsub.f32 0.0, %v6726_v6  ;;  %v3533_v37 = vpop.f32.mrb[21].mxu0  ;;  %v5549_v12 = vpop.eup %5548  ;;  %v3827_v20 = vmul.f32 %v5547_v48, %v6654_v15  ;;  %5566 = vrcp.f32 %v3770_v24 }
 0x1f5   : > { %v3681_v49 = vsub.f32 0.0, %v6730_v8  ;;  %v5254_v50 = vadd.f32 %v3533_v37, %v1982_v22  ;;  %v5551_v61 = vpop.eup %5550  ;;  %3860 = vst [vmem:[%s6703_s19 + $0x28] sm:$0xff] %v3828_v17  ;;  %v3769_v14 = vadd.f32 1.0, %v5549_v12  ;;  %5568 = vpow2.f32 %v3729_v57  ;;  %v5018_v29 = vpop.f32.mrb[22].mxu1 }
 0x1f6   : > { %v3733_v18 = vmul.f32 1.442695, %v3682_v19  ;;  %v6738_v11 = vadd.f32 %v5253_v21, %v6632_v52  ;;  %v5553_v23 = vpop.eup %5552  ;;  %3859 = vst [vmem:[%s6703_s19 + $0x20] sm:$0xff] %v3827_v20  ;;  %v3772_v26 = vadd.f32 1.0, %v5551_v61  ;;  %5570 = vpow2.f32 %v3727_v47  ;;  %v5218_v31 = vpop.f32.mrb[22].mxu0 }
 0x1f7   : > { %v3731_v27 = vmul.f32 1.442695, %v3681_v49  ;;  %v6742_v15 = vadd.f32 %v5254_v50, %v6632_v52  ;;  %v5555_v32 = vpop.eup %5554  ;;  %v3830_v34 = vmul.f32 %v5553_v23, %v6659_v16  ;;  %5572 = vrcp.f32 %v3769_v14  ;;  %v1992_v39 = vpop.f32.mrb[23].mxu1 }
 0x1f8   : > { %v3684_v36 = vsub.f32 0.0, %v6738_v11  ;;  %v5255_v38 = vadd.f32 %v5218_v31, %v5018_v29  ;;  %v3543_v40 = vpop.f32.mrb[23].mxu0  ;;  %5574 = vrcp.f32 %v3772_v26  ;;  %v3771_v41 = vadd.f32 1.0, %v5555_v32 }
 0x1f9   : > { %v3683_v42 = vsub.f32 0.0, %v6742_v15  ;;  %v5256_v43 = vadd.f32 %v3543_v40, %v1992_v39  ;;  %v5557_v59 = vpop.eup %5556  ;;  %3862 = vst [vmem:[%s6703_s19 + $0x38] sm:$0xff] %v3830_v34  ;;  %5576 = vpow2.f32 %v3733_v18  ;;  %v5021_v63 = vpop.f32.mrb[24].mxu1 }
 0x1fa   : > { %v3737_v51 = vmul.f32 1.442695, %v3684_v36  ;;  %v6749_v54 = vadd.f32 %v5255_v38, %v6632_v52  ;;  %v5559_v16 = vpop.eup %5558  ;;  %v3829_v56 = vmul.f32 %v5557_v59, %v6662_v1  ;;  %5578 = vrcp.f32 %v3771_v41  ;;  %v5221_v0 = vpop.f32.mrb[24].mxu0 }
 0x1fb   : > { %v3735_v60 = vmul.f32 1.442695, %v3683_v42  ;;  %v6753_v45 = vadd.f32 %v5256_v43, %v6632_v52  ;;  %v5561_v46 = vpop.eup %5560  ;;  %v3832_v2 = vmul.f32 %v5559_v16, %v6667_v30  ;;  %5580 = vpow2.f32 %v3731_v27  ;;  %v2002_v7 = vpop.f32.mrb[25].mxu1 }
 0x1fc   : > { %v3686_v4 = vsub.f32 0.0, %v6749_v54  ;;  %v5257_v5 = vadd.f32 %v5221_v0, %v5021_v63  ;;  %v3553_v10 = vpop.f32.mrb[25].mxu0  ;;  %v5563_v57 = vpop.eup %5562  ;;  %3861 = vst [vmem:[%s6703_s19 + $0x30] sm:$0xff] %v3829_v56  ;;  %v3774_v1 = vadd.f32 1.0, %v5561_v46  ;;  %5582 = vpow2.f32 %v3737_v51 }
 0x1fd   : > { %v3685_v28 = vsub.f32 0.0, %v6753_v45  ;;  %v5258_v24 = vadd.f32 %v3553_v10, %v2002_v7  ;;  %v5565_v47 = vpop.eup %5564  ;;  %3864 = vst [vmem:[%s6703_s19 + $0x48] sm:$0xff] %v3832_v2  ;;  %v3773_v9 = vadd.f32 1.0, %v5563_v57  ;;  %5584 = vpow2.f32 %v3735_v60  ;;  %v5024_v22 = vpop.f32.mrb[26].mxu1 }
 0x1fe   : > { %v3741_v13 = vmul.f32 1.442695, %v3686_v4  ;;  %v6761_v30 = vadd.f32 %v5257_v5, %v6632_v52  ;;  %v5567_v48 = vpop.eup %5566  ;;  %v3831_v17 = vmul.f32 %v5565_v47, %v6670_v35  ;;  %5586 = vrcp.f32 %v3774_v1  ;;  %v5224_v37 = vpop.f32.mrb[26].mxu0 }
 0x1ff   : > { %v3739_v19 = vmul.f32 1.442695, %v3685_v28  ;;  %v6765_v21 = vadd.f32 %v5258_v24, %v6632_v52  ;;  %v5569_v12 = vpop.eup %5568  ;;  %v3834_v20 = vmul.f32 %v5567_v48, %v6677_v53  ;;  %5588 = vrcp.f32 %v3773_v9  ;;  %v2012_v61 = vpop.f32.mrb[27].mxu1 }
 0x200   : > { %v3688_v49 = vsub.f32 0.0, %v6761_v30  ;;  %v5259_v50 = vadd.f32 %v5224_v37, %v5024_v22  ;;  %v3563_v14 = vpop.f32.mrb[27].mxu0  ;;  %v5571_v18 = vpop.eup %5570  ;;  %3863 = vst [vmem:[%s6703_s19 + $0x40] sm:$0xff] %v3831_v17  ;;  %v3776_v35 = vadd.f32 1.0, %v5569_v12  ;;  %5590 = vpow2.f32 %v3741_v13 }
 0x201   : > { %v3687_v23 = vsub.f32 0.0, %v6765_v21  ;;  %v5260_v26 = vadd.f32 %v3563_v14, %v2012_v61  ;;  %v5573_v27 = vpop.eup %5572  ;;  %3866 = vst [vmem:[%s6703_s19 + $0x58] sm:$0xff] %v3834_v20  ;;  %v3775_v29 = vadd.f32 1.0, %v5571_v18  ;;  %5592 = vpow2.f32 %v3739_v19  ;;  %v5027_v39 = vpop.f32.mrb[28].mxu1 }
 0x202   : > { %v3745_v31 = vmul.f32 1.442695, %v3688_v49  ;;  %v6773_v53 = vadd.f32 %v5259_v50, %v6632_v52  ;;  %v5575_v32 = vpop.eup %5574  ;;  %v3833_v34 = vmul.f32 %v5573_v27, %v6680_v62  ;;  %5594 = vrcp.f32 %v3776_v35  ;;  %v5227_v40 = vpop.f32.mrb[28].mxu0 }
 0x203   : > { %v3743_v36 = vmul.f32 1.442695, %v3687_v23  ;;  %v6777_v38 = vadd.f32 %v5260_v26, %v6632_v52  ;;  %v5577_v41 = vpop.eup %5576  ;;  %v3836_v42 = vmul.f32 %v5575_v32, %v6687_v55  ;;  %5596 = vrcp.f32 %v3775_v29  ;;  %v2022_v51 = vpop.f32.mrb[29].mxu1 }
 0x204   : > { %v3690_v43 = vsub.f32 0.0, %v6773_v53  ;;  %v5261_v59 = vadd.f32 %v5227_v40, %v5027_v39  ;;  %v3573_v16 = vpop.f32.mrb[29].mxu0  ;;  %v5579_v56 = vpop.eup %5578  ;;  %3865 = vst [vmem:[%s6703_s19 + $0x50] sm:$0xff] %v3833_v34  ;;  %v3778_v62 = vadd.f32 1.0, %v5577_v41  ;;  %5598 = vpow2.f32 %v3745_v31 }
 0x205   : > { %v3689_v60 = vsub.f32 0.0, %v6777_v38  ;;  %v5262_v63 = vadd.f32 %v3573_v16, %v2022_v51  ;;  %v5581_v0 = vpop.eup %5580  ;;  %3868 = vst [vmem:[%s6703_s19 + $0x68] sm:$0xff] %v3836_v42  ;;  %v3835_v46 = vmul.f32 %v5579_v56, %v6690_v25  ;;  %5600 = vpow2.f32 %v3743_v36  ;;  %v5030_v57 = vpop.f32.mrb[30].mxu1 }
 0x206   : > { %v3749_v55 = vmul.f32 1.442695, %v3690_v43  ;;  %v6786_v2 = vadd.f32 %v5261_v59, %v6632_v52  ;;  %v5583_v4 = vpop.eup %5582  ;;  %5602 = vrcp.f32 %v3778_v62  ;;  %v3777_v5 = vadd.f32 1.0, %v5581_v0  ;;  %v5230_v1 = vpop.f32.mrb[30].mxu0 }
 0x207   : > { %v3747_v7 = vmul.f32 1.442695, %v3689_v60  ;;  %v6789_v10 = vadd.f32 %v5262_v63, %v6632_v52  ;;  %v5585_v28 = vpop.eup %5584  ;;  %3867 = vst [vmem:[%s6703_s19 + $0x60] sm:$0xff] %v3835_v46  ;;  %v3780_v24 = vadd.f32 1.0, %v5583_v4  ;;  %v5263_v47 = vadd.f32 %v5230_v1, %v5030_v57  ;;  %v2032_v9 = vpop.f32.mrb[31].mxu1 }
 0x208   : > { %5604 = vpow2.f32 %v3749_v55  ;;  %v3692_v25 = vsub.f32 0.0, %v6786_v2  ;;  %v3583_v13 = vpop.f32.mrb[31].mxu0  ;;  %v5587_v48 = vpop.eup %5586  ;;  %v3779_v17 = vadd.f32 1.0, %v5585_v28 }
 0x209   : > { %5606 = vrcp.f32 %v3777_v5  ;;  %v3691_v19 = vsub.f32 0.0, %v6789_v10  ;;  %v5264_v22 = vadd.f32 %v3583_v13, %v2032_v9  ;;  %v5589_v37 = vpop.eup %5588  ;;  %v3838_v12 = vmul.f32 %v5587_v48, %v6698_v33 }
 0x20a   : > { %5608 = vrcp.f32 %v3780_v24  ;;  %v3753_v20 = vmul.f32 1.442695, %v3692_v25  ;;  %v6796_v49 = vadd.f32 %v5263_v47, %v6632_v52  ;;  %v5591_v50 = vpop.eup %5590  ;;  %v3837_v61 = vmul.f32 %v5589_v37, %v6706_v3 }
 0x20b   : > { %5610 = vrcp.f32 %v3779_v17  ;;  %v6800_v14 = vadd.f32 %v5264_v22, %v6632_v52  ;;  %v5593_v18 = vpop.eup %5592  ;;  %3870 = vst [vmem:[%s6703_s19 + $0x78] sm:$0xff] %v3838_v12  ;;  %v3782_v35 = vadd.f32 1.0, %v5591_v50  ;;  %v3751_v23 = vmul.f32 1.442695, %v3691_v19 }
 0x20c   : > { %5612 = vpow2.f32 %v3747_v7  ;;  %v3694_v33 = vsub.f32 0.0, %v6796_v49  ;;  %v5595_v26 = vpop.eup %5594  ;;  %3869 = vst [vmem:[%s6703_s19 + $0x70] sm:$0xff] %v3837_v61  ;;  %v3781_v27 = vadd.f32 1.0, %v5593_v18 }
 0x20d   : > { %5614 = vpow2.f32 %v3753_v20  ;;  %v3693_v29 = vsub.f32 0.0, %v6800_v14  ;;  %v5597_v3 = vpop.eup %5596  ;;  %v3840_v31 = vmul.f32 %v5595_v26, %v6714_v58 }
 0x20e   : > { %5616 = vrcp.f32 %v3782_v35  ;;  %v3757_v52 = vmul.f32 1.442695, %v3694_v33  ;;  %v5599_v32 = vpop.eup %5598  ;;  %v3839_v34 = vmul.f32 %v5597_v3, %v6718_v44 }
 0x20f   : > { %5618 = vrcp.f32 %v3781_v27  ;;  %v5601_v36 = vpop.eup %5600  ;;  %3872 = vst [vmem:[%s6703_s19 + $0x88] sm:$0xff] %v3840_v31  ;;  %v3784_v39 = vadd.f32 1.0, %v5599_v32  ;;  %v3755_v40 = vmul.f32 1.442695, %v3693_v29 }
 0x210   : > { %5620 = vpow2.f32 %v3751_v23  ;;  %v5603_v41 = vpop.eup %5602  ;;  %3871 = vst [vmem:[%s6703_s19 + $0x80] sm:$0xff] %v3839_v34  ;;  %v3783_v42 = vadd.f32 1.0, %v5601_v36 }
 0x211   : > { %5622 = vpow2.f32 %v3757_v52  ;;  %v3842_v58 = vmul.f32 %v5603_v41, %v6726_v6 }
 0x212   : > { %v5605_v43 = vpop.eup %5604  ;;  %5624 = vrcp.f32 %v3784_v39 }
 0x213   : > { %v5607_v59 = vpop.eup %5606  ;;  %5626 = vrcp.f32 %v3783_v42  ;;  %v3786_v44 = vadd.f32 1.0, %v5605_v43  ;;  %3874 = vst [vmem:[%s6703_s19 + $0x98] sm:$0xff] %v3842_v58 }
 0x214   : > { %v5609_v51 = vpop.eup %5608  ;;  %v3841_v16 = vmul.f32 %v5607_v59, %v6730_v8  ;;  %5628 = vpow2.f32 %v3755_v40 }
 0x215   : > { %v5611_v56 = vpop.eup %5610  ;;  %v3844_v62 = vmul.f32 %v5609_v51, %v6738_v11  ;;  %5630 = vrcp.f32 %v3786_v44 }
 0x216   : > { %v5613_v60 = vpop.eup %5612  ;;  %3873 = vst [vmem:[%s6703_s19 + $0x90] sm:$0xff] %v3841_v16  ;;  %v3843_v6 = vmul.f32 %v5611_v56, %v6742_v15 }
 0x217   : > { %v5615_v63 = vpop.eup %5614  ;;  %3876 = vst [vmem:[%s6703_s19 + $0xa8] sm:$0xff] %v3844_v62  ;;  %v3785_v0 = vadd.f32 1.0, %v5613_v60 }
 0x218   : > { %v5617_v46 = vpop.eup %5616  ;;  %3875 = vst [vmem:[%s6703_s19 + $0xa0] sm:$0xff] %v3843_v6  ;;  %v3788_v55 = vadd.f32 1.0, %v5615_v63 }
 0x219   : > { %v5619_v4 = vpop.eup %5618  ;;  %v3846_v8 = vmul.f32 %v5617_v46, %v6749_v54  ;;  %5632 = vrcp.f32 %v3785_v0 }
 0x21a   : > { %v5621_v5 = vpop.eup %5620  ;;  %v3845_v11 = vmul.f32 %v5619_v4, %v6753_v45  ;;  %5634 = vrcp.f32 %v3788_v55 }
 0x21b   : > { %v5623_v7 = vpop.eup %5622  ;;  %3878 = vst [vmem:[%s6703_s19 + $0xb8] sm:$0xff] %v3846_v8  ;;  %v3787_v15 = vadd.f32 1.0, %v5621_v5 }
 0x21c   : > { %v5625_v57 = vpop.eup %5624  ;;  %3877 = vst [vmem:[%s6703_s19 + $0xb0] sm:$0xff] %v3845_v11  ;;  %v3790_v1 = vadd.f32 1.0, %v5623_v7 }
 0x21d   : > { %v5627_v28 = vpop.eup %5626  ;;  %v3848_v24 = vmul.f32 %v5625_v57, %v6761_v30  ;;  %5636 = vrcp.f32 %v3787_v15 }
 0x21e   : > { %v5629_v54 = vpop.eup %5628  ;;  %v3847_v25 = vmul.f32 %v5627_v28, %v6765_v21  ;;  %5638 = vrcp.f32 %v3790_v1 }
 0x21f   : > { %v5631_v45 = vpop.eup %5630  ;;  %3880 = vst [vmem:[%s6703_s19 + $0xc8] sm:$0xff] %v3848_v24  ;;  %v3789_v47 = vadd.f32 1.0, %v5629_v54 }
 0x220   : > { %3879 = vst [vmem:[%s6703_s19 + $0xc0] sm:$0xff] %v3847_v25  ;;  %v3850_v9 = vmul.f32 %v5631_v45, %v6773_v53 }
 0x221   : > { %5640 = vrcp.f32 %v3789_v47 }
 0x222   : > { %3882 = vst [vmem:[%s6703_s19 + $0xd8] sm:$0xff] %v3850_v9 }
 0x223   : > { %v5633_v13 = vpop.eup %5632 }
 0x224   : > { %v5635_v30 = vpop.eup %5634  ;;  %v3849_v48 = vmul.f32 %v5633_v13, %v6777_v38 }
 0x225   : > { %v3852_v17 = vmul.f32 %v5635_v30, %v6786_v2 }
 0x226   : > { %3881 = vst [vmem:[%s6703_s19 + $0xd0] sm:$0xff] %v3849_v48 }
 0x227   : > { %v5637_v21 = vpop.eup %5636  ;;  %3884 = vst [vmem:[%s6703_s19 + $0xe8] sm:$0xff] %v3852_v17 }
 0x228   : > { %v5639_v19 = vpop.eup %5638  ;;  %v3851_v22 = vmul.f32 %v5637_v21, %v6789_v10 }
 0x229   : > { %v3854_v37 = vmul.f32 %v5639_v19, %v6796_v49 }
 0x22a   : > { %3883 = vst [vmem:[%s6703_s19 + $0xe0] sm:$0xff] %v3851_v22 }
 0x22b   : > { %v5641_v12 = vpop.eup %5640  ;;  %3886 = vst [vmem:[%s6703_s19 + $0xf8] sm:$0xff] %v3854_v37 }
 0x22c   : > { %v3853_v53 = vmul.f32 %v5641_v12, %v6800_v14 }
 0x22e   : > { %3885 = vst [vmem:[%s6703_s19 + $0xf0] sm:$0xff] %v3853_v53 }
 0x22f PF: > { %s13_s14 = sadd.s32 1, %s5664_s14   ;;  %s6960_s12 = smov %s5660_s13 }
 0x230   : > { %p10_p5 = scmp.ge.s32.totalorder %s13_s14, 4   ;;  %s6961_s13 = smov %s6963_s15 }
 0x232   :  { %12 = sbr.rel (!%p10_p5) target bundleno = 2 (0x2), region = 73 }

</bundles_post_ra>
